<compile_context>
chip_gen: v6e
topology: v6e:2x2x1
jax: 0.10.0
libtpu: 0.0.40
codegen_flags: <defaults>
</compile_context>

<pallas_src>
import math

import jax
import jax.numpy as jnp
import numpy as np
from jax import lax
from jax.experimental import pallas as pl
from jax.experimental.pallas import tpu as pltpu

# ---------------- config (small, BERT-like) ----------------
B, S, H = 2, 8, 32          # batch, seq_len, hidden_size
BS = B * S
NUM_HEADS = 4
HEAD_DIM = H // NUM_HEADS
INTER = 128                 # intermediate_size
NUM_LAYERS = 2
LN_EPS = 1e-12
VEC_W = 128                 # packed bias/LN slab width (lanes)
_INV_SQRT_DH = 1.0 / math.sqrt(HEAD_DIM)

assert 4 * H == VEC_W and INTER == VEC_W, "packing below assumes 4H == INTER == 128"


# ---------------- shared math helpers ----------------
def _layer_norm(x, g, b):
    mu = jnp.mean(x, axis=-1, keepdims=True)
    var = jnp.mean((x - mu) ** 2, axis=-1, keepdims=True)
    return (x - mu) * lax.rsqrt(var + LN_EPS) * g + b


def _gelu(x):
    # "gelu" (erf form) from the reference ACT2FN table
    return x * 0.5 * (1.0 + lax.erf(x / math.sqrt(2.0)))


# ---------------- fused all-layer encoder kernel ----------------
def encoder_kernel(h_ref, mask_ref, wqkvo_ref, wi_ref, w2_ref, vec_ref, out_ref):
    lid = pl.program_id(0)

    # Seed the resident residual stream (the output block) from the input.
    @pl.when(lid == 0)
    def _():
        out_ref[...] = h_ref[...]

    x = out_ref[...]                          # (BS, H) f32 residual stream
    xb = x.astype(jnp.bfloat16)
    vec = vec_ref[0]                          # (8, 128) packed bias/LN params
    mask3 = mask_ref[...][:, None, :]         # (B, 1, S) additive attn bias
    w_qkvo = wqkvo_ref[0]                     # (H, 4H) bf16 = [Wq|Wk|Wv|Wo]

    # --- QuantBertSelfAttention: fused Q|K|V projection, one 128-lane push ---
    # (lanes 3H:4H of the result = x@Wo + bo are never read -> free filler)
    qkv = jnp.dot(xb, w_qkvo, preferred_element_type=jnp.float32) + vec[0:1, :]
    qkvb = qkv[:, :3 * H].astype(jnp.bfloat16).reshape(B, S, 3 * H)
    q3 = qkvb[:, :, 0 * H:1 * H]
    k3 = qkvb[:, :, 1 * H:2 * H]
    v3 = qkvb[:, :, 2 * H:3 * H]

    # Per-head attention with heads as static lane slices (no XLU transposes).
    ctx_parts = []
    for h in range(NUM_HEADS):
        sl = slice(h * HEAD_DIM, (h + 1) * HEAD_DIM)
        qh = q3[:, :, sl]
        kh = k3[:, :, sl]
        vh = v3[:, :, sl]

        s = jnp.einsum('bqd,bkd->bqk', qh, kh,
                       preferred_element_type=jnp.float32)
        s = s * _INV_SQRT_DH + mask3

        m = jnp.max(s, axis=-1, keepdims=True)
        p = jnp.exp(s - m)
        probs = p * pl.reciprocal(jnp.sum(p, axis=-1, keepdims=True),
                                  approx=True)
        # dropout(attention_probs): identity in eval mode

        ctx_parts.append(jnp.einsum('bqk,bkd->bqd',
                                    probs.astype(jnp.bfloat16), vh,
                                    preferred_element_type=jnp.float32))

    # Assemble the (BS, H) context slab and apply Wo in ONE K=H matmul.
    ctx = jnp.concatenate(ctx_parts, axis=-1).reshape(BS, H).astype(jnp.bfloat16)
    wo = w_qkvo[:, 3 * H:4 * H]               # (H, H) bf16
    attn = (jnp.dot(ctx, wo, preferred_element_type=jnp.float32)
            + vec[0:1, 3 * H:4 * H])

    # --- QuantBertSelfOutput: residual + LayerNorm (f32) ---
    attn_out = _layer_norm(attn + x, vec[1:2, :H], vec[2:3, :H])

    # --- QuantBertIntermediate: dense + gelu (128-lane-dense slab) ---
    inter = (jnp.dot(attn_out.astype(jnp.bfloat16), wi_ref[0],
                     preferred_element_type=jnp.float32) + vec[3:4, :])
    inter = _gelu(inter)

    # --- QuantBertOutput: dense + residual + LayerNorm ---
    ffn = (jnp.dot(inter.astype(jnp.bfloat16), w2_ref[0],
                   preferred_element_type=jnp.float32) + vec[4:5, :H])
    out_ref[...] = _layer_norm(ffn + attn_out, vec[5:6, :H], vec[6:7, :H])


# ---------------- wrapper ----------------
def bert_encoder(h, mask, layer_params):
    """QuantBertEncoder.forward (returns only final hidden states)."""
    assert len(layer_params) == NUM_LAYERS
    h2 = h.astype(jnp.float32).reshape(BS, H)

    def pack_layer(p):
        w_qkvo = jnp.concatenate([p['wq'], p['wk'], p['wv'], p['wo']], axis=1)
        vec = jnp.zeros((8, VEC_W), jnp.float32)
        vec = vec.at[0, :].set(jnp.concatenate([p['bq'], p['bk'],
                                                p['bv'], p['bo']]))
        vec = vec.at[1, :H].set(p['g1'])
        vec = vec.at[2, :H].set(p['b1'])
        vec = vec.at[3, :INTER].set(p['bi'])
        vec = vec.at[4, :H].set(p['bo2'])
        vec = vec.at[5, :H].set(p['g2'])
        vec = vec.at[6, :H].set(p['b2'])
        return (w_qkvo.astype(jnp.bfloat16),
                p['wi'].astype(jnp.bfloat16),
                p['w2'].astype(jnp.bfloat16),
                vec)

    packed = [pack_layer(p) for p in layer_params]
    w_qkvo = jnp.stack([t[0] for t in packed])        # (L, H, 4H)  bf16
    wi = jnp.stack([t[1] for t in packed])            # (L, H, INTER) bf16
    w2 = jnp.stack([t[2] for t in packed])            # (L, INTER, H) bf16
    vec = jnp.stack([t[3] for t in packed])           # (L, 8, 128) f32

    def const2(l):
        return (0, 0)

    def per_layer3(l):
        return (l, 0, 0)

    in_specs = [
        pl.BlockSpec((BS, H), const2),                 # residual seed: resident
        pl.BlockSpec((B, S), const2),                  # mask: resident
        pl.BlockSpec((1, H, 4 * H), per_layer3),       # fused Wq|Wk|Wv|Wo
        pl.BlockSpec((1, H, INTER), per_layer3),       # Wi
        pl.BlockSpec((1, INTER, H), per_layer3),       # W2
        pl.BlockSpec((1, 8, VEC_W), per_layer3),       # packed biases / LN
    ]

    args = (h2, mask, w_qkvo, wi, w2, vec)

    flops_per_layer = (2 * BS * H * 4 * H                        # fused qkv(o)
                       + 2 * B * NUM_HEADS * S * S * HEAD_DIM * 2  # scores+ctx
                       + 2 * BS * H * H                          # Wo
                       + 2 * BS * H * INTER * 2)                 # ffn
    transc_per_layer = B * NUM_HEADS * S * S + BS * INTER + 4 * BS
    bytes_accessed = sum(int(np.prod(a.shape)) * a.dtype.itemsize
                         for a in args) + BS * H * 4
    ce = pl.CostEstimate(flops=NUM_LAYERS * flops_per_layer,
                         transcendentals=NUM_LAYERS * transc_per_layer,
                         bytes_accessed=bytes_accessed)

    out = pl.pallas_call(
        encoder_kernel,
        out_shape=jax.ShapeDtypeStruct((BS, H), jnp.float32),
        grid_spec=pltpu.PrefetchScalarGridSpec(
            num_scalar_prefetch=0,
            grid=(NUM_LAYERS,),
            in_specs=in_specs,
            out_specs=pl.BlockSpec((BS, H), const2)),   # resident residual
        compiler_params=pltpu.CompilerParams(
            dimension_semantics=("arbitrary",),         # layers are sequential
            vmem_limit_bytes=32 * 1024 * 1024),
        cost_estimate=ce,
    )(*args)
    return out.reshape(B, S, H)


# ---------------- pure-JAX f32 reference (for sanity check) ----------------
def _ref_layer(x, mask, p):
    def lin(z, w, b):
        return z @ w + b
    q = lin(x, p['wq'], p['bq']).reshape(B, S, NUM_HEADS, HEAD_DIM).transpose(0, 2, 1, 3)
    k = lin(x, p['wk'], p['bk']).reshape(B, S, NUM_HEADS, HEAD_DIM).transpose(0, 2, 1, 3)
    v = lin(x, p['wv'], p['bv']).reshape(B, S, NUM_HEADS, HEAD_DIM).transpose(0, 2, 1, 3)
    s = jnp.einsum('bhqd,bhkd->bhqk', q, k) / math.sqrt(HEAD_DIM)
    s = s + mask[:, None, None, :]
    a = jax.nn.softmax(s, axis=-1)
    ctx = jnp.einsum('bhqk,bhkd->bhqd', a, v).transpose(0, 2, 1, 3).reshape(B, S, H)
    y = lin(ctx, p['wo'], p['bo'])
    y = _layer_norm(y + x, p['g1'], p['b1'])
    i = _gelu(lin(y, p['wi'], p['bi']))
    o = lin(i, p['w2'], p['bo2'])
    return _layer_norm(o + y, p['g2'], p['b2'])


def _ref_encoder(x, mask, layer_params):
    for p in layer_params:
        x = _ref_layer(x, mask, p)
    return x


# ---------------- deterministic parameter init ----------------
def init_layer_params(key):
    ks = jax.random.split(key, 12)

    def lin(k, din, dout):
        kw, kb = jax.random.split(k)
        w = 0.02 * jax.random.normal(kw, (din, dout), jnp.float32)
        b = 0.01 * jax.random.normal(kb, (dout,), jnp.float32)
        return w, b

    wq, bq = lin(ks[0], H, H)
    wk, bk = lin(ks[1], H, H)
    wv, bv = lin(ks[2], H, H)
    wo, bo = lin(ks[3], H, H)
    wi, bi = lin(ks[4], H, INTER)
    w2, bo2 = lin(ks[5], INTER, H)
    g1 = 1.0 + 0.01 * jax.random.normal(ks[6], (H,), jnp.float32)
    b1 = 0.01 * jax.random.normal(ks[7], (H,), jnp.float32)
    g2 = 1.0 + 0.01 * jax.random.normal(ks[8], (H,), jnp.float32)
    b2 = 0.01 * jax.random.normal(ks[9], (H,), jnp.float32)
    return dict(wq=wq, bq=bq, wk=wk, bk=bk, wv=wv, bv=bv,
                wo=wo, bo=bo, g1=g1, b1=b1,
                wi=wi, bi=bi, w2=w2, bo2=bo2, g2=g2, b2=b2)


if __name__ == "__main__":
    key = jax.random.PRNGKey(0)
    k_h, k_p = jax.random.split(key)

    hidden_states = jax.random.normal(k_h, (B, S, H), jnp.float32)

    # Additive attention mask: last 2 tokens of batch element 1 are padded.
    valid = jnp.array([[1.0] * S, [1.0] * (S - 2) + [0.0] * 2],
                      dtype=jnp.float32)
    attention_mask = (1.0 - valid) * -10000.0            # (B, S)

    layer_params = [init_layer_params(jax.random.fold_in(k_p, i))
                    for i in range(NUM_LAYERS)]

    out = bert_encoder(hidden_states, attention_mask, layer_params)
    out = jax.block_until_ready(out)

    ref = _ref_encoder(hidden_states, attention_mask, layer_params)
    np.testing.assert_allclose(np.asarray(out), np.asarray(ref),
                               rtol=2e-2, atol=2e-2)

    print("KERNEL_OK")
</pallas_src>

<mosaic_0001>
module attributes {stable_mosaic.version = 11 : i64} {
  func.func @encoder_kernel(%arg0: i32, %arg1: memref<16x32xf32, #tpu.memory_space<vmem>>, %arg2: memref<2x8xf32, #tpu.memory_space<vmem>>, %arg3: memref<1x32x128xbf16, #tpu.memory_space<vmem>>, %arg4: memref<1x32x128xbf16, #tpu.memory_space<vmem>>, %arg5: memref<1x128x32xbf16, #tpu.memory_space<vmem>>, %arg6: memref<1x8x128xf32, #tpu.memory_space<vmem>>, %arg7: memref<16x32xf32, #tpu.memory_space<vmem>>) attributes {dimension_semantics = [#tpu.dimension_semantics<arbitrary>], iteration_bounds = array<i64: 2>, scalar_prefetch = 0 : i64, scratch_operands = 0 : i64, tpu.core_type = #tpu.core_type<tc>, window_params = [{pipeline_mode = #tpu.pipeline_mode<synchronous>, transform_indices = @transform_0, window_bounds = array<i64: 16, 32>}, {pipeline_mode = #tpu.pipeline_mode<synchronous>, transform_indices = @transform_1, window_bounds = array<i64: 2, 8>}, {transform_indices = @transform_2, window_bounds = array<i64: 1, 32, 128>}, {transform_indices = @transform_3, window_bounds = array<i64: 1, 32, 128>}, {transform_indices = @transform_4, window_bounds = array<i64: 1, 128, 32>}, {transform_indices = @transform_5, window_bounds = array<i64: 1, 8, 128>}, {pipeline_mode = #tpu.pipeline_mode<synchronous>, transform_indices = @transform_6, window_bounds = array<i64: 16, 32>}]} {
    %c0_i32 = arith.constant 0 : i32
    %0 = arith.cmpi eq, %arg0, %c0_i32 : i32
    %1 = arith.extui %0 : i1 to i32
    %c0_i32_0 = arith.constant 0 : i32
    %2 = arith.cmpi ne, %1, %c0_i32_0 : i32
    scf.if %2 {
      %c0_54 = arith.constant 0 : index
      %c0_55 = arith.constant 0 : index
      %182 = vector.load %arg1[%c0_54, %c0_55] : memref<16x32xf32, #tpu.memory_space<vmem>>, vector<16x32xf32>
      %c0_56 = arith.constant 0 : index
      %c0_57 = arith.constant 0 : index
      %183 = vector.load %arg7[%c0_56, %c0_57] : memref<16x32xf32, #tpu.memory_space<vmem>>, vector<16x32xf32>
      tpu.vector_store %arg7[%c0_56, %c0_57], %182 {strides = array<i32>} : memref<16x32xf32, #tpu.memory_space<vmem>>, vector<16x32xf32>,
    } else {
    }
    %c0 = arith.constant 0 : index
    %c0_1 = arith.constant 0 : index
    %3 = vector.load %arg7[%c0, %c0_1] : memref<16x32xf32, #tpu.memory_space<vmem>>, vector<16x32xf32>
    %4 = arith.truncf %3 : vector<16x32xf32> to vector<16x32xbf16>
    %c0_2 = arith.constant 0 : index
    %c0_3 = arith.constant 0 : index
    %c0_4 = arith.constant 0 : index
    %5 = vector.load %arg6[%c0_2, %c0_3, %c0_4] : memref<1x8x128xf32, #tpu.memory_space<vmem>>, vector<1x8x128xf32>
    %6 = vector.shape_cast %5 : vector<1x8x128xf32> to vector<8x128xf32>
    %c0_5 = arith.constant 0 : index
    %c0_6 = arith.constant 0 : index
    %7 = vector.load %arg2[%c0_5, %c0_6] : memref<2x8xf32, #tpu.memory_space<vmem>>, vector<2x8xf32>
    %8 = vector.shape_cast %7 : vector<2x8xf32> to vector<2x1x8xf32>
    %c0_7 = arith.constant 0 : index
    %c0_8 = arith.constant 0 : index
    %c0_9 = arith.constant 0 : index
    %9 = vector.load %arg3[%c0_7, %c0_8, %c0_9] : memref<1x32x128xbf16, #tpu.memory_space<vmem>>, vector<1x32x128xbf16>
    %10 = vector.shape_cast %9 : vector<1x32x128xbf16> to vector<32x128xbf16>
    %cst = arith.constant dense<0.000000e+00> : vector<16x128xf32>
    %11 = tpu.matmul %4, %10, %cst {dimension_numbers = #tpu.dot_dimension_numbers<[1], [0], [0], [1], [0, 0, 1, 1], [], []>} : vector<16x32xbf16>, vector<32x128xbf16>, vector<16x128xf32> -> vector<16x128xf32>
    %12 = vector.extract_strided_slice %6 {offsets = [0, 0], sizes = [1, 128], strides = [1, 1]} : vector<8x128xf32> to vector<1x128xf32>
    %13 = vector.broadcast %12 : vector<1x128xf32> to vector<16x128xf32>
    %14 = arith.addf %11, %13 : vector<16x128xf32>
    %15 = vector.extract_strided_slice %14 {offsets = [0, 0], sizes = [16, 96], strides = [1, 1]} : vector<16x128xf32> to vector<16x96xf32>
    %16 = arith.truncf %15 : vector<16x96xf32> to vector<16x96xbf16>
    %17 = vector.shape_cast %16 : vector<16x96xbf16> to vector<2x8x96xbf16>
    %18 = vector.extract_strided_slice %17 {offsets = [0, 0, 0], sizes = [2, 8, 32], strides = [1, 1, 1]} : vector<2x8x96xbf16> to vector<2x8x32xbf16>
    %19 = vector.extract_strided_slice %17 {offsets = [0, 0, 32], sizes = [2, 8, 32], strides = [1, 1, 1]} : vector<2x8x96xbf16> to vector<2x8x32xbf16>
    %20 = vector.extract_strided_slice %17 {offsets = [0, 0, 64], sizes = [2, 8, 32], strides = [1, 1, 1]} : vector<2x8x96xbf16> to vector<2x8x32xbf16>
    %21 = vector.extract_strided_slice %18 {offsets = [0, 0, 0], sizes = [2, 8, 8], strides = [1, 1, 1]} : vector<2x8x32xbf16> to vector<2x8x8xbf16>
    %22 = vector.extract_strided_slice %19 {offsets = [0, 0, 0], sizes = [2, 8, 8], strides = [1, 1, 1]} : vector<2x8x32xbf16> to vector<2x8x8xbf16>
    %23 = vector.extract_strided_slice %20 {offsets = [0, 0, 0], sizes = [2, 8, 8], strides = [1, 1, 1]} : vector<2x8x32xbf16> to vector<2x8x8xbf16>
    "tpu.trace_start"() <{level = 10 : i32, message = "bqd,bkd->bqk"}> : () -> ()
    %cst_10 = arith.constant dense<0.000000e+00> : vector<2x8x8xf32>
    %24 = tpu.matmul %21, %22, %cst_10 {dimension_numbers = #tpu.dot_dimension_numbers<[2], [2], [1], [1], [0, 0, 0, 1, 1, 1], [0], [0]>} : vector<2x8x8xbf16>, vector<2x8x8xbf16>, vector<2x8x8xf32> -> vector<2x8x8xf32>
    "tpu.trace_stop"() : () -> ()
    %cst_11 = arith.constant 0.353553385 : f32
    %25 = vector.broadcast %cst_11 : f32 to vector<2x8x8xf32>
    %26 = arith.mulf %24, %25 : vector<2x8x8xf32>
    %27 = vector.broadcast %8 : vector<2x1x8xf32> to vector<2x8x8xf32>
    %28 = arith.addf %26, %27 : vector<2x8x8xf32>
    %cst_12 = arith.constant dense<0xFF800000> : vector<2x8xf32>
    %29 = vector.multi_reduction <maximumf>, %28, %cst_12 [2] : vector<2x8x8xf32> to vector<2x8xf32>
    %30 = vector.shape_cast %29 : vector<2x8xf32> to vector<2x8x1xf32>
    %31 = vector.broadcast %30 : vector<2x8x1xf32> to vector<2x8x8xf32>
    %32 = arith.subf %28, %31 : vector<2x8x8xf32>
    %33 = math.exp %32 : vector<2x8x8xf32>
    %cst_13 = arith.constant dense<0.000000e+00> : vector<2x8xf32>
    %34 = vector.multi_reduction <add>, %33, %cst_13 [2] : vector<2x8x8xf32> to vector<2x8xf32>
    %35 = vector.shape_cast %34 : vector<2x8xf32> to vector<2x8x1xf32>
    %36 = tpu.reciprocal %35 {approx = true} : vector<2x8x1xf32> -> vector<2x8x1xf32>
    %37 = vector.broadcast %36 : vector<2x8x1xf32> to vector<2x8x8xf32>
    %38 = arith.mulf %33, %37 : vector<2x8x8xf32>
    %39 = arith.truncf %38 : vector<2x8x8xf32> to vector<2x8x8xbf16>
    "tpu.trace_start"() <{level = 10 : i32, message = "bqk,bkd->bqd"}> : () -> ()
    %cst_14 = arith.constant dense<0.000000e+00> : vector<2x8x8xf32>
    %40 = tpu.matmul %39, %23, %cst_14 {dimension_numbers = #tpu.dot_dimension_numbers<[2], [1], [1], [2], [0, 0, 0, 1, 1, 2], [0], [0]>} : vector<2x8x8xbf16>, vector<2x8x8xbf16>, vector<2x8x8xf32> -> vector<2x8x8xf32>
    "tpu.trace_stop"() : () -> ()
    %41 = vector.extract_strided_slice %18 {offsets = [0, 0, 8], sizes = [2, 8, 8], strides = [1, 1, 1]} : vector<2x8x32xbf16> to vector<2x8x8xbf16>
    %42 = vector.extract_strided_slice %19 {offsets = [0, 0, 8], sizes = [2, 8, 8], strides = [1, 1, 1]} : vector<2x8x32xbf16> to vector<2x8x8xbf16>
    %43 = vector.extract_strided_slice %20 {offsets = [0, 0, 8], sizes = [2, 8, 8], strides = [1, 1, 1]} : vector<2x8x32xbf16> to vector<2x8x8xbf16>
    "tpu.trace_start"() <{level = 10 : i32, message = "bqd,bkd->bqk"}> : () -> ()
    %cst_15 = arith.constant dense<0.000000e+00> : vector<2x8x8xf32>
    %44 = tpu.matmul %41, %42, %cst_15 {dimension_numbers = #tpu.dot_dimension_numbers<[2], [2], [1], [1], [0, 0, 0, 1, 1, 1], [0], [0]>} : vector<2x8x8xbf16>, vector<2x8x8xbf16>, vector<2x8x8xf32> -> vector<2x8x8xf32>
    "tpu.trace_stop"() : () -> ()
    %cst_16 = arith.constant 0.353553385 : f32
    %45 = vector.broadcast %cst_16 : f32 to vector<2x8x8xf32>
    %46 = arith.mulf %44, %45 : vector<2x8x8xf32>
    %47 = vector.broadcast %8 : vector<2x1x8xf32> to vector<2x8x8xf32>
    %48 = arith.addf %46, %47 : vector<2x8x8xf32>
    %cst_17 = arith.constant dense<0xFF800000> : vector<2x8xf32>
    %49 = vector.multi_reduction <maximumf>, %48, %cst_17 [2] : vector<2x8x8xf32> to vector<2x8xf32>
    %50 = vector.shape_cast %49 : vector<2x8xf32> to vector<2x8x1xf32>
    %51 = vector.broadcast %50 : vector<2x8x1xf32> to vector<2x8x8xf32>
    %52 = arith.subf %48, %51 : vector<2x8x8xf32>
    %53 = math.exp %52 : vector<2x8x8xf32>
    %cst_18 = arith.constant dense<0.000000e+00> : vector<2x8xf32>
    %54 = vector.multi_reduction <add>, %53, %cst_18 [2] : vector<2x8x8xf32> to vector<2x8xf32>
    %55 = vector.shape_cast %54 : vector<2x8xf32> to vector<2x8x1xf32>
    %56 = tpu.reciprocal %55 {approx = true} : vector<2x8x1xf32> -> vector<2x8x1xf32>
    %57 = vector.broadcast %56 : vector<2x8x1xf32> to vector<2x8x8xf32>
    %58 = arith.mulf %53, %57 : vector<2x8x8xf32>
    %59 = arith.truncf %58 : vector<2x8x8xf32> to vector<2x8x8xbf16>
    "tpu.trace_start"() <{level = 10 : i32, message = "bqk,bkd->bqd"}> : () -> ()
    %cst_19 = arith.constant dense<0.000000e+00> : vector<2x8x8xf32>
    %60 = tpu.matmul %59, %43, %cst_19 {dimension_numbers = #tpu.dot_dimension_numbers<[2], [1], [1], [2], [0, 0, 0, 1, 1, 2], [0], [0]>} : vector<2x8x8xbf16>, vector<2x8x8xbf16>, vector<2x8x8xf32> -> vector<2x8x8xf32>
    "tpu.trace_stop"() : () -> ()
    %61 = vector.extract_strided_slice %18 {offsets = [0, 0, 16], sizes = [2, 8, 8], strides = [1, 1, 1]} : vector<2x8x32xbf16> to vector<2x8x8xbf16>
    %62 = vector.extract_strided_slice %19 {offsets = [0, 0, 16], sizes = [2, 8, 8], strides = [1, 1, 1]} : vector<2x8x32xbf16> to vector<2x8x8xbf16>
    %63 = vector.extract_strided_slice %20 {offsets = [0, 0, 16], sizes = [2, 8, 8], strides = [1, 1, 1]} : vector<2x8x32xbf16> to vector<2x8x8xbf16>
    "tpu.trace_start"() <{level = 10 : i32, message = "bqd,bkd->bqk"}> : () -> ()
    %cst_20 = arith.constant dense<0.000000e+00> : vector<2x8x8xf32>
    %64 = tpu.matmul %61, %62, %cst_20 {dimension_numbers = #tpu.dot_dimension_numbers<[2], [2], [1], [1], [0, 0, 0, 1, 1, 1], [0], [0]>} : vector<2x8x8xbf16>, vector<2x8x8xbf16>, vector<2x8x8xf32> -> vector<2x8x8xf32>
    "tpu.trace_stop"() : () -> ()
    %cst_21 = arith.constant 0.353553385 : f32
    %65 = vector.broadcast %cst_21 : f32 to vector<2x8x8xf32>
    %66 = arith.mulf %64, %65 : vector<2x8x8xf32>
    %67 = vector.broadcast %8 : vector<2x1x8xf32> to vector<2x8x8xf32>
    %68 = arith.addf %66, %67 : vector<2x8x8xf32>
    %cst_22 = arith.constant dense<0xFF800000> : vector<2x8xf32>
    %69 = vector.multi_reduction <maximumf>, %68, %cst_22 [2] : vector<2x8x8xf32> to vector<2x8xf32>
    %70 = vector.shape_cast %69 : vector<2x8xf32> to vector<2x8x1xf32>
    %71 = vector.broadcast %70 : vector<2x8x1xf32> to vector<2x8x8xf32>
    %72 = arith.subf %68, %71 : vector<2x8x8xf32>
    %73 = math.exp %72 : vector<2x8x8xf32>
    %cst_23 = arith.constant dense<0.000000e+00> : vector<2x8xf32>
    %74 = vector.multi_reduction <add>, %73, %cst_23 [2] : vector<2x8x8xf32> to vector<2x8xf32>
    %75 = vector.shape_cast %74 : vector<2x8xf32> to vector<2x8x1xf32>
    %76 = tpu.reciprocal %75 {approx = true} : vector<2x8x1xf32> -> vector<2x8x1xf32>
    %77 = vector.broadcast %76 : vector<2x8x1xf32> to vector<2x8x8xf32>
    %78 = arith.mulf %73, %77 : vector<2x8x8xf32>
    %79 = arith.truncf %78 : vector<2x8x8xf32> to vector<2x8x8xbf16>
    "tpu.trace_start"() <{level = 10 : i32, message = "bqk,bkd->bqd"}> : () -> ()
    %cst_24 = arith.constant dense<0.000000e+00> : vector<2x8x8xf32>
    %80 = tpu.matmul %79, %63, %cst_24 {dimension_numbers = #tpu.dot_dimension_numbers<[2], [1], [1], [2], [0, 0, 0, 1, 1, 2], [0], [0]>} : vector<2x8x8xbf16>, vector<2x8x8xbf16>, vector<2x8x8xf32> -> vector<2x8x8xf32>
    "tpu.trace_stop"() : () -> ()
    %81 = vector.extract_strided_slice %18 {offsets = [0, 0, 24], sizes = [2, 8, 8], strides = [1, 1, 1]} : vector<2x8x32xbf16> to vector<2x8x8xbf16>
    %82 = vector.extract_strided_slice %19 {offsets = [0, 0, 24], sizes = [2, 8, 8], strides = [1, 1, 1]} : vector<2x8x32xbf16> to vector<2x8x8xbf16>
    %83 = vector.extract_strided_slice %20 {offsets = [0, 0, 24], sizes = [2, 8, 8], strides = [1, 1, 1]} : vector<2x8x32xbf16> to vector<2x8x8xbf16>
    "tpu.trace_start"() <{level = 10 : i32, message = "bqd,bkd->bqk"}> : () -> ()
    %cst_25 = arith.constant dense<0.000000e+00> : vector<2x8x8xf32>
    %84 = tpu.matmul %81, %82, %cst_25 {dimension_numbers = #tpu.dot_dimension_numbers<[2], [2], [1], [1], [0, 0, 0, 1, 1, 1], [0], [0]>} : vector<2x8x8xbf16>, vector<2x8x8xbf16>, vector<2x8x8xf32> -> vector<2x8x8xf32>
    "tpu.trace_stop"() : () -> ()
    %cst_26 = arith.constant 0.353553385 : f32
    %85 = vector.broadcast %cst_26 : f32 to vector<2x8x8xf32>
    %86 = arith.mulf %84, %85 : vector<2x8x8xf32>
    %87 = vector.broadcast %8 : vector<2x1x8xf32> to vector<2x8x8xf32>
    %88 = arith.addf %86, %87 : vector<2x8x8xf32>
    %cst_27 = arith.constant dense<0xFF800000> : vector<2x8xf32>
    %89 = vector.multi_reduction <maximumf>, %88, %cst_27 [2] : vector<2x8x8xf32> to vector<2x8xf32>
    %90 = vector.shape_cast %89 : vector<2x8xf32> to vector<2x8x1xf32>
    %91 = vector.broadcast %90 : vector<2x8x1xf32> to vector<2x8x8xf32>
    %92 = arith.subf %88, %91 : vector<2x8x8xf32>
    %93 = math.exp %92 : vector<2x8x8xf32>
    %cst_28 = arith.constant dense<0.000000e+00> : vector<2x8xf32>
    %94 = vector.multi_reduction <add>, %93, %cst_28 [2] : vector<2x8x8xf32> to vector<2x8xf32>
    %95 = vector.shape_cast %94 : vector<2x8xf32> to vector<2x8x1xf32>
    %96 = tpu.reciprocal %95 {approx = true} : vector<2x8x1xf32> -> vector<2x8x1xf32>
    %97 = vector.broadcast %96 : vector<2x8x1xf32> to vector<2x8x8xf32>
    %98 = arith.mulf %93, %97 : vector<2x8x8xf32>
    %99 = arith.truncf %98 : vector<2x8x8xf32> to vector<2x8x8xbf16>
    "tpu.trace_start"() <{level = 10 : i32, message = "bqk,bkd->bqd"}> : () -> ()
    %cst_29 = arith.constant dense<0.000000e+00> : vector<2x8x8xf32>
    %100 = tpu.matmul %99, %83, %cst_29 {dimension_numbers = #tpu.dot_dimension_numbers<[2], [1], [1], [2], [0, 0, 0, 1, 1, 2], [0], [0]>} : vector<2x8x8xbf16>, vector<2x8x8xbf16>, vector<2x8x8xf32> -> vector<2x8x8xf32>
    "tpu.trace_stop"() : () -> ()
    %101 = tpu.concatenate %40, %60, %80, %100 in 2 : vector<2x8x8xf32>, vector<2x8x8xf32>, vector<2x8x8xf32>, vector<2x8x8xf32> -> vector<2x8x32xf32>
    %102 = vector.shape_cast %101 : vector<2x8x32xf32> to vector<16x32xf32>
    %103 = arith.truncf %102 : vector<16x32xf32> to vector<16x32xbf16>
    %104 = vector.extract_strided_slice %10 {offsets = [0, 96], sizes = [32, 32], strides = [1, 1]} : vector<32x128xbf16> to vector<32x32xbf16>
    %cst_30 = arith.constant dense<0.000000e+00> : vector<16x32xf32>
    %105 = tpu.matmul %103, %104, %cst_30 {dimension_numbers = #tpu.dot_dimension_numbers<[1], [0], [0], [1], [0, 0, 1, 1], [], []>} : vector<16x32xbf16>, vector<32x32xbf16>, vector<16x32xf32> -> vector<16x32xf32>
    %106 = vector.extract_strided_slice %6 {offsets = [0, 96], sizes = [1, 32], strides = [1, 1]} : vector<8x128xf32> to vector<1x32xf32>
    %107 = vector.broadcast %106 : vector<1x32xf32> to vector<16x32xf32>
    %108 = arith.addf %105, %107 : vector<16x32xf32>
    %109 = arith.addf %108, %3 : vector<16x32xf32>
    %110 = vector.extract_strided_slice %6 {offsets = [1, 0], sizes = [1, 32], strides = [1, 1]} : vector<8x128xf32> to vector<1x32xf32>
    %111 = vector.extract_strided_slice %6 {offsets = [2, 0], sizes = [1, 32], strides = [1, 1]} : vector<8x128xf32> to vector<1x32xf32>
    %cst_31 = arith.constant dense<0.000000e+00> : vector<16xf32>
    %112 = vector.multi_reduction <add>, %109, %cst_31 [1] : vector<16x32xf32> to vector<16xf32>
    %113 = vector.shape_cast %112 : vector<16xf32> to vector<16x1xf32>
    %cst_32 = arith.constant 3.200000e+01 : f32
    %114 = vector.broadcast %cst_32 : f32 to vector<16x1xf32>
    %115 = arith.divf %113, %114 : vector<16x1xf32>
    %116 = vector.broadcast %115 : vector<16x1xf32> to vector<16x32xf32>
    %117 = arith.subf %109, %116 : vector<16x32xf32>
    %118 = arith.mulf %117, %117 : vector<16x32xf32>
    %cst_33 = arith.constant dense<0.000000e+00> : vector<16xf32>
    %119 = vector.multi_reduction <add>, %118, %cst_33 [1] : vector<16x32xf32> to vector<16xf32>
    %120 = vector.shape_cast %119 : vector<16xf32> to vector<16x1xf32>
    %cst_34 = arith.constant 3.200000e+01 : f32
    %121 = vector.broadcast %cst_34 : f32 to vector<16x1xf32>
    %122 = arith.divf %120, %121 : vector<16x1xf32>
    %123 = vector.broadcast %115 : vector<16x1xf32> to vector<16x32xf32>
    %124 = arith.subf %109, %123 : vector<16x32xf32>
    %cst_35 = arith.constant 9.99999996E-13 : f32
    %125 = vector.broadcast %cst_35 : f32 to vector<16x1xf32>
    %126 = arith.addf %122, %125 : vector<16x1xf32>
    %127 = math.rsqrt %126 : vector<16x1xf32>
    %128 = vector.broadcast %127 : vector<16x1xf32> to vector<16x32xf32>
    %129 = arith.mulf %124, %128 : vector<16x32xf32>
    %130 = vector.broadcast %110 : vector<1x32xf32> to vector<16x32xf32>
    %131 = arith.mulf %129, %130 : vector<16x32xf32>
    %132 = vector.broadcast %111 : vector<1x32xf32> to vector<16x32xf32>
    %133 = arith.addf %131, %132 : vector<16x32xf32>
    %134 = arith.truncf %133 : vector<16x32xf32> to vector<16x32xbf16>
    %c0_36 = arith.constant 0 : index
    %c0_37 = arith.constant 0 : index
    %c0_38 = arith.constant 0 : index
    %135 = vector.load %arg4[%c0_36, %c0_37, %c0_38] : memref<1x32x128xbf16, #tpu.memory_space<vmem>>, vector<1x32x128xbf16>
    %136 = vector.shape_cast %135 : vector<1x32x128xbf16> to vector<32x128xbf16>
    %cst_39 = arith.constant dense<0.000000e+00> : vector<16x128xf32>
    %137 = tpu.matmul %134, %136, %cst_39 {dimension_numbers = #tpu.dot_dimension_numbers<[1], [0], [0], [1], [0, 0, 1, 1], [], []>} : vector<16x32xbf16>, vector<32x128xbf16>, vector<16x128xf32> -> vector<16x128xf32>
    %138 = vector.extract_strided_slice %6 {offsets = [3, 0], sizes = [1, 128], strides = [1, 1]} : vector<8x128xf32> to vector<1x128xf32>
    %139 = vector.broadcast %138 : vector<1x128xf32> to vector<16x128xf32>
    %140 = arith.addf %137, %139 : vector<16x128xf32>
    %cst_40 = arith.constant 5.000000e-01 : f32
    %141 = vector.broadcast %cst_40 : f32 to vector<16x128xf32>
    %142 = arith.mulf %140, %141 : vector<16x128xf32>
    %cst_41 = arith.constant 1.41421354 : f32
    %143 = vector.broadcast %cst_41 : f32 to vector<16x128xf32>
    %144 = arith.divf %140, %143 : vector<16x128xf32>
    %145 = math.erf %144 : vector<16x128xf32>
    %cst_42 = arith.constant 1.000000e+00 : f32
    %146 = vector.broadcast %cst_42 : f32 to vector<16x128xf32>
    %147 = arith.addf %146, %145 : vector<16x128xf32>
    %148 = arith.mulf %142, %147 : vector<16x128xf32>
    %149 = arith.truncf %148 : vector<16x128xf32> to vector<16x128xbf16>
    %c0_43 = arith.constant 0 : index
    %c0_44 = arith.constant 0 : index
    %c0_45 = arith.constant 0 : index
    %150 = vector.load %arg5[%c0_43, %c0_44, %c0_45] : memref<1x128x32xbf16, #tpu.memory_space<vmem>>, vector<1x128x32xbf16>
    %151 = vector.shape_cast %150 : vector<1x128x32xbf16> to vector<128x32xbf16>
    %cst_46 = arith.constant dense<0.000000e+00> : vector<16x32xf32>
    %152 = tpu.matmul %149, %151, %cst_46 {dimension_numbers = #tpu.dot_dimension_numbers<[1], [0], [0], [1], [0, 0, 1, 1], [], []>} : vector<16x128xbf16>, vector<128x32xbf16>, vector<16x32xf32> -> vector<16x32xf32>
    %153 = vector.extract_strided_slice %6 {offsets = [4, 0], sizes = [1, 32], strides = [1, 1]} : vector<8x128xf32> to vector<1x32xf32>
    %154 = vector.broadcast %153 : vector<1x32xf32> to vector<16x32xf32>
    %155 = arith.addf %152, %154 : vector<16x32xf32>
    %156 = arith.addf %155, %133 : vector<16x32xf32>
    %157 = vector.extract_strided_slice %6 {offsets = [5, 0], sizes = [1, 32], strides = [1, 1]} : vector<8x128xf32> to vector<1x32xf32>
    %158 = vector.extract_strided_slice %6 {offsets = [6, 0], sizes = [1, 32], strides = [1, 1]} : vector<8x128xf32> to vector<1x32xf32>
    %cst_47 = arith.constant dense<0.000000e+00> : vector<16xf32>
    %159 = vector.multi_reduction <add>, %156, %cst_47 [1] : vector<16x32xf32> to vector<16xf32>
    %160 = vector.shape_cast %159 : vector<16xf32> to vector<16x1xf32>
    %cst_48 = arith.constant 3.200000e+01 : f32
    %161 = vector.broadcast %cst_48 : f32 to vector<16x1xf32>
    %162 = arith.divf %160, %161 : vector<16x1xf32>
    %163 = vector.broadcast %162 : vector<16x1xf32> to vector<16x32xf32>
    %164 = arith.subf %156, %163 : vector<16x32xf32>
    %165 = arith.mulf %164, %164 : vector<16x32xf32>
    %cst_49 = arith.constant dense<0.000000e+00> : vector<16xf32>
    %166 = vector.multi_reduction <add>, %165, %cst_49 [1] : vector<16x32xf32> to vector<16xf32>
    %167 = vector.shape_cast %166 : vector<16xf32> to vector<16x1xf32>
    %cst_50 = arith.constant 3.200000e+01 : f32
    %168 = vector.broadcast %cst_50 : f32 to vector<16x1xf32>
    %169 = arith.divf %167, %168 : vector<16x1xf32>
    %170 = vector.broadcast %162 : vector<16x1xf32> to vector<16x32xf32>
    %171 = arith.subf %156, %170 : vector<16x32xf32>
    %cst_51 = arith.constant 9.99999996E-13 : f32
    %172 = vector.broadcast %cst_51 : f32 to vector<16x1xf32>
    %173 = arith.addf %169, %172 : vector<16x1xf32>
    %174 = math.rsqrt %173 : vector<16x1xf32>
    %175 = vector.broadcast %174 : vector<16x1xf32> to vector<16x32xf32>
    %176 = arith.mulf %171, %175 : vector<16x32xf32>
    %177 = vector.broadcast %157 : vector<1x32xf32> to vector<16x32xf32>
    %178 = arith.mulf %176, %177 : vector<16x32xf32>
    %179 = vector.broadcast %158 : vector<1x32xf32> to vector<16x32xf32>
    %180 = arith.addf %178, %179 : vector<16x32xf32>
    %c0_52 = arith.constant 0 : index
    %c0_53 = arith.constant 0 : index
    %181 = vector.load %arg7[%c0_52, %c0_53] : memref<16x32xf32, #tpu.memory_space<vmem>>, vector<16x32xf32>
    tpu.vector_store %arg7[%c0_52, %c0_53], %180 {strides = array<i32>} : memref<16x32xf32, #tpu.memory_space<vmem>>, vector<16x32xf32>,
    return
  }
  func.func @transform_0(%arg0: i32) -> (i32, i32) {
    %c0_i32 = arith.constant 0 : i32
    %c0_i32_0 = arith.constant 0 : i32
    %c0_i32_1 = arith.constant 0 : i32
    return %c0_i32, %c0_i32_0 : i32, i32
  }
  func.func @transform_1(%arg0: i32) -> (i32, i32) {
    %c0_i32 = arith.constant 0 : i32
    %c0_i32_0 = arith.constant 0 : i32
    %c0_i32_1 = arith.constant 0 : i32
    return %c0_i32, %c0_i32_0 : i32, i32
  }
  func.func @transform_2(%arg0: i32) -> (i32, i32, i32) {
    %c0_i32 = arith.constant 0 : i32
    %c0_i32_0 = arith.constant 0 : i32
    %c0_i32_1 = arith.constant 0 : i32
    return %arg0, %c0_i32, %c0_i32_0 : i32, i32, i32
  }
  func.func @transform_3(%arg0: i32) -> (i32, i32, i32) {
    %c0_i32 = arith.constant 0 : i32
    %c0_i32_0 = arith.constant 0 : i32
    %c0_i32_1 = arith.constant 0 : i32
    return %arg0, %c0_i32, %c0_i32_0 : i32, i32, i32
  }
  func.func @transform_4(%arg0: i32) -> (i32, i32, i32) {
    %c0_i32 = arith.constant 0 : i32
    %c0_i32_0 = arith.constant 0 : i32
    %c0_i32_1 = arith.constant 0 : i32
    return %arg0, %c0_i32, %c0_i32_0 : i32, i32, i32
  }
  func.func @transform_5(%arg0: i32) -> (i32, i32, i32) {
    %c0_i32 = arith.constant 0 : i32
    %c0_i32_0 = arith.constant 0 : i32
    %c0_i32_1 = arith.constant 0 : i32
    return %arg0, %c0_i32, %c0_i32_0 : i32, i32, i32
  }
  func.func @transform_6(%arg0: i32) -> (i32, i32) {
    %c0_i32 = arith.constant 0 : i32
    %c0_i32_0 = arith.constant 0 : i32
    %c0_i32_1 = arith.constant 0 : i32
    return %c0_i32, %c0_i32_0 : i32, i32
  }
}

</mosaic_0001>

<bundles_post_ra>
// kernel: tpu_custom_call.1
= control target key start
LH: loop header
LB: loop body
LE: loop exit
PB: predicated region body
PF: predicated region fallthrough
CT: control target
= control target key end

     0   :  { %11 = vsyncpa [#allocation3], 0  ;;  %s2190_s21 = smov 0   ;;  %s2488_s0 = inlined_call_operand.vmem [shape: f32[16,32], index: 0, kind: input, shape index: {}]   ;;  %s2489_s1 = inlined_call_operand.vmem [shape: f32[2,8], index: 1, kind: input, shape index: {}]   ;;  %s2490_s2 = inlined_call_operand.vmem [shape: bf16[2,32,128], index: 2, kind: input, shape index: {}]   ;;  %s2491_s3 = inlined_call_operand.vmem [shape: bf16[2,32,128], index: 3, kind: input, shape index: {}]   ;;  %s2492_s4 = inlined_call_operand.vmem [shape: bf16[2,128,32], index: 4, kind: input, shape index: {}]   ;;  %s2493_s5 = inlined_call_operand.vmem [shape: f32[2,8,128], index: 5, kind: input, shape index: {}]   ;;  %s2494_s6 = inlined_call_operand.hbm [shape: f32[16,32], index: 6, kind: output, shape index: {}]  }
   0x1 LB: > { %s2196_s22 = sadd.s32 4294967295, %s2133_s21   ;;  %p1751_p0 = scmp.ge.s32.totalorder %s2133_s21, 1  ;;  %s2133_s21 = sphi %s2190_s21, %s17_s21  }
   0x2   : > { %p237_p1 = scmp.lt.s32.totalorder %s2133_s21, 3 }
   0x4   : > { %p238_p2 = pnand %p1751_p0, %p237_p1 }
   0x5   : > { %p276_p3 = scmp.lt.s32.totalorder (!%p238_p2), %s2196_s22, 1  ;;  %p1759_p4 = scmp.ne.s32.totalorder (!%p238_p2), %s2196_s22, 0 }
   0x6   : > { %241 = sbr.rel (%p238_p2) target bundleno = 3986 (0xf92), region = 44 }
   0xb   : > { %s277_s23 = scalar_select %p276_p3, %s2196_s22, 1 }
   0xc   : > { %299 = sbr.rel (%p1759_p4) target bundleno = 19 (0x13), region = 48 }
   0xd   : > { %s1798_s24 = sshll.u32 %s277_s23, 4  ;;  %s1800_s25 = sshll.u32 %s277_s23, 6 }
   0xe   : > { %s280_s28 = scalar_lea.vmem %s2490_s2, %s1798_s24  ;;  %s2208_s7 = scalar_lea.vmem %s2491_s3, %s1798_s24 }
   0xf   : > { %s2213_s10 = scalar_lea.vmem %s2492_s4, %s1800_s25  ;;  %s1758_s11 = sshll.u32 %s277_s23, 3 }
  0x10   : > { %s2218_s14 = scalar_lea.vmem %s2493_s5, %s1758_s11 }
  0x11   : > { %v300_v0 = vld [vmem:[%s2488_s0] sm:$0xff]  ;;  %vm302_vm0 = vcmask 261120   ;;  %v301_v1 = vld [vmem:[%s2488_s0 + $0x8] sm:$0xff] }
  0x12   : > { %303 = vst.msk [vmem:[#allocation2] sm:$0xff] %vm302_vm0, %v300_v0  ;;  %304 = vst.msk [vmem:[#allocation2 + $0x8] sm:$0xff] %vm302_vm0, %v301_v1 }
  0x13 PF: > { %v2227_v2 = vld [vmem:[%s280_s28 + $0x8] sm:$0xff]   ;;  %v2135_v3 = vmov 0.0   ;;  %v2232_v4 = vld [vmem:[%s280_s28] sm:$0xff]   ;;  %vm2136_vm1 = vmmov 0   ;;  %vm353_vm2 = vcmask 261120   ;;  %v322_v8 = vlaneseq  ;;  %s2137_s19 = smov 96  }
  0x14   : > { %1853 = vmatprep.subr.bf16.mxu0 %v2135_v3  ;;  %1873 = vmatprep.subr.bf16.mxu1 %v2135_v3  ;;  %v2254_v11 = vld [vmem:[%s2218_s14] sm:$0xff]  ;;  %vm406_vm3 = vcmask 64512   ;;  %v2138_v25 = vmov 1966171168   ;;  %s2139_s24 = smov 64   ;;  %s2140_s25 = smov 88  }
  0x15   : > { %1854 = vmatpush3.bf16.msra.mxu0 %v2227_v2  ;;  %1857 = vmatprep.mubr.msk.bf16.mxu0 %vm2136_vm1, %v2135_v3  ;;  %v2250_v9 = vshrl.u32 %v322_v8, 7  ;;  %v320_v26 = vunpack.c.l.s4 %v2138_v25  ;;  %v1760_v29 = vld.sshfl [vmem:[%s2489_s1] sm:$0x11 pattern:$0x75316420]  ;;  %vm544_vm4 = vcmask 1043456  }
  0x16   : > { %1855 = vmatprep.subr.bf16.mxu0 %v2135_v3  ;;  %1875 = vmatprep.mubr.msk.bf16.mxu1 %vm2136_vm1, %v2135_v3  ;;  %v318_v31 = vcombine.high %v1760_v29, %v1760_v29  ;;  %s2141_s26 = smov 120   ;;  %s2142_s27 = smov 56   ;;  %vm1334_vm5 = vcmask 130048   ;;  %vm1337_vm6 = vcmask 195584  }
  0x17   : > { %v339_v10 = vsub.s32 0, %v2250_v9  ;;  %v321_v27 = vunpack.c.0.s8 %v320_v26  ;;  %s2143_s28 = smov 80   ;;  %s2144_s29 = smov 112  }
  0x18   : > { %s2145_s30 = smov 48   ;;  %s2146_s8 = smov 72  }
  0x19   : > { %v2236_v5 = vld [vmem:[#allocation2] sm:$0xff]  ;;  %v2238_v6 = vld [vmem:[#allocation2 + $0x8] sm:$0xff]  ;;  %1856 = vmatpush3.bf16.msra.mxu0 %v2232_v4  ;;  %v2257_v12 = vrot.slane %v2254_v11, %v339_v10  ;;  %v324_v28 = vsub.s32 %v321_v27, %v2250_v9  ;;  %s2147_s9 = smov 104   ;;  %s2148_s11 = smov 40  }
  0x1a   : > { %v307_v7 = vpack.c.bf16 %v2238_v6, %v2236_v5  ;;  %1861 = vmatprep.subr.bf16.mxu0 %v2135_v3  ;;  %s2149_s12 = smov 32   ;;  %s2150_s13 = smov 8  }
  0x1b   : > { %v325_v30 = vrot.slane %v1760_v29, %v324_v28  ;;  %v332_v37 = vrot.slane %v318_v31, %v324_v28  ;;  %s2151_s15 = smov 16   ;;  %s2152_s16 = smov 24  }
  0x1c   : > { %1858 = vmatmul.mubr.msk.bf16.vlgmr.msra.gmra.mxu0 %vm353_vm2, %v307_v7  ;;  %p1997_p5 = scmp.eq.s32.totalorder %s2196_s22, 1 }
  0x1d   : > { %1863 = vmatprep.mubr.msk.bf16.mxu0 %vm2136_vm1, %v2135_v3  ;;  %v2283_v32 = vrot.slane %v325_v30, %v339_v10  ;;  %v2287_v41 = vrot.slane %v332_v37, %v339_v10 }
  0xdc   : > { %v391_v13 = vpop.f32.mrf.mxu0 }
  0xdd   : > { %v392_v14 = vadd.f32 %v391_v13, %v2257_v12 }
  0xde   : > { %v1859_v15 = vpop.f32.mrf.mxu0 }
  0xdf   : > { %v2260_v16 = vpack.c.bf16 %v392_v14, %v392_v14 }
  0xe0   : > { %v394_v17 = vpop.f32.mrf.mxu0 }
  0xe1   : > { %v395_v18 = vadd.f32 %v394_v17, %v2257_v12  ;;  %404 = vrot.lane.b32.xlu0 %v2260_v16, %s2137_s19 }
  0xe2   : > { %v1860_v19 = vpop.f32.mrf.mxu0 }
  0xe3   : > { %v2264_v20 = vpack.c.bf16 %v395_v18, %v395_v18 }
  0xe5   : > { %453 = vrot.lane.b32.xlu0 %v2264_v20, %s2137_s19 }
 0x153   : > { %v405_v21 = vpop.permute.xlu0 %404 }
 0x154   : > { %v411_v22 = vsel %vm406_vm3, %v405_v21, 0 }
 0x155   : > { %1862 = vmatpush3.bf16.xpose.msra.mxu0 %v411_v22 }
 0x156   : > { %1867 = vmatprep.subr.bf16.mxu0 %v2135_v3 }
 0x157   : > { %v454_v23 = vpop.permute.xlu0 %453 }
 0x158   : > { %v459_v24 = vsel %vm406_vm3, %v454_v23, 0 }
 0x15c   : > { %1864 = vmatmul.mubr.msk.bf16.vlgmr.msra.gmra.mxu0 %vm406_vm3, %v2260_v16 }
 0x15d   : > { %1868 = vmatpush3.bf16.xpose.msra.mxu0 %v459_v24  ;;  %1869 = vmatprep.mubr.msk.bf16.mxu0 %vm2136_vm1, %v2135_v3 }
 0x15e   : > { %1879 = vmatprep.subr.bf16.mxu0 %v2135_v3 }
 0x164   : > { %1870 = vmatmul.mubr.msk.bf16.vlgmr.msra.gmra.mxu0 %vm406_vm3, %v2264_v20 }
 0x165   : > { %1881 = vmatprep.mubr.msk.bf16.mxu0 %vm2136_vm1, %v2135_v3 }
 0x21c   : > { %v447_v33 = vpop.f32.mrf.mxu0 }
 0x21d   : > { %v501_v34 = vmul.f32 0.35355338, %v447_v33 }
 0x21e   : > { %v1865_v35 = vpop.f32.mrf.mxu0 }
 0x21f   : > { %v513_v36 = vadd.f32 %v2283_v32, %v501_v34 }
 0x220   : > { %v450_v38 = vpop.f32.mrf.mxu0 }
 0x221   : > { %v515_v39 = vsel %vm406_vm3, %v513_v36, -inf }
 0x222   : > { %516 = vmax.xlane.f32.xlu1 %v515_v39  ;;  %v1866_v40 = vpop.f32.mrf.mxu0 }
 0x224   : > { %v495_v42 = vpop.f32.mrf.mxu0 }
 0x225   : > { %v502_v43 = vmul.f32 0.35355338, %v495_v42 }
 0x226   : > { %v1871_v44 = vpop.f32.mrf.mxu0 }
 0x227   : > { %v514_v45 = vadd.f32 %v2287_v41, %v502_v43 }
 0x228   : > { %v498_v46 = vpop.f32.mrf.mxu0 }
 0x229   : > { %v518_v47 = vsel %vm406_vm3, %v514_v45, -inf }
 0x22a   : > { %519 = vmax.xlane.f32.xlu1 %v518_v47  ;;  %v1872_v48 = vpop.f32.mrf.mxu0 }
 0x23b   : > { %539 = vrot.lane.b32.xlu1 %v2260_v16, %s2139_s24 }
 0x23f   : > { %588 = vrot.lane.b32.xlu1 %v2264_v20, %s2139_s24 }
 0x243   : > { %638 = vrot.lane.b32.xlu1 %v2260_v16, %s2140_s25 }
 0x2ab   : > { %v517_v49 = vpop.xlane.xlu1 %516 }
 0x2ac   : > { %v521_v50 = vsub.f32 %v513_v36, %v517_v49 }
 0x2ae   : > { %v523_v51 = vmul.f32 1.442695, %v521_v50 }
 0x2b0   : > { %2054 = vpow2.f32 %v523_v51 }
 0x2b3   : > { %v520_v52 = vpop.xlane.xlu1 %519 }
 0x2b4   : > { %v522_v53 = vsub.f32 %v514_v45, %v520_v52 }
 0x2b6   : > { %v525_v54 = vmul.f32 1.442695, %v522_v53 }
 0x2b7   : > { %v540_v55 = vpop.permute.xlu1 %539 }
 0x2b8   : > { %2056 = vpow2.f32 %v525_v54  ;;  %v546_v56 = vsel %vm544_vm4, %v540_v55, 0 }
 0x2b9   : > { %1874 = vmatpush3.bf16.msra.mxu1 %v546_v56 }
 0x2ba   : > { %1885 = vmatprep.subr.bf16.mxu1 %v2135_v3 }
 0x2bb   : > { %v589_v57 = vpop.permute.xlu1 %588 }
 0x2bc   : > { %v594_v58 = vsel %vm544_vm4, %v589_v57, 0 }
 0x2bd   : > { %v2055_v59 = vpop.eup %2054  ;;  %1880 = vmatpush3.bf16.msra.mxu0 %v594_v58 }
 0x2be   : > { %v527_v60 = vsel %vm406_vm3, %v2055_v59, 0.0  ;;  %1891 = vmatprep.subr.bf16.mxu0 %v2135_v3 }
 0x2bf   : > { %528 = vadd.xlane.f32.xlu0 %v527_v60  ;;  %v639_v0 = vpop.permute.xlu1 %638 }
 0x2c0   : > { %v644_v13 = vsel %vm406_vm3, %v639_v0, 0 }
 0x2c5   : > { %v2057_v61 = vpop.eup %2056 }
 0x2c6   : > { %v530_v62 = vsel %vm406_vm3, %v2057_v61, 0.0 }
 0x2c7   : > { %531 = vadd.xlane.f32.xlu1 %v530_v62 }
 0x2d5   : > { %636 = vrot.lane.b32.xlu0 %v2260_v16, %s2141_s26 }
 0x2d8   : > { %688 = vrot.lane.b32.xlu1 %v2264_v20, %s2140_s25 }
 0x2dc   : > { %686 = vrot.lane.b32.xlu1 %v2264_v20, %s2141_s26 }
 0x348   : > { %v529_v63 = vpop.xlane.xlu0 %528 }
 0x349   : > { %2058 = vrcp.f32 %v529_v63 }
 0x34c   : > { %v637_v19 = vpop.permute.xlu0 %636 }
 0x350   : > { %v532_v1 = vpop.xlane.xlu1 %531 }
 0x351   : > { %2060 = vrcp.f32 %v532_v1 }
 0x354   : > { %v689_v17 = vpop.permute.xlu1 %688 }
 0x355   : > { %v694_v21 = vsel %vm406_vm3, %v689_v17, 0 }
 0x356   : > { %v2059_v7 = vpop.eup %2058 }
 0x357   : > { %v535_v8 = vmul.f32 %v2059_v7, %v2055_v59 }
 0x358   : > { %v687_v22 = vpop.permute.xlu1 %686 }
 0x359   : > { %v537_v10 = vpack.c.bf16 %v535_v8, %v535_v8 }
 0x35b   : > { %1876 = vmatmul.mubr.msk.bf16.vlgmr.msra.gmra.mxu1 %vm406_vm3, %v537_v10 }
 0x35c   : > { %1886 = vmatpush3.bf16.xpose.msra.mxu1 %v644_v13  ;;  %1887 = vmatprep.mubr.msk.bf16.mxu1 %vm2136_vm1, %v2135_v3 }
 0x35d   : > { %1897 = vmatprep.subr.bf16.mxu1 %v2135_v3 }
 0x35e   : > { %v2061_v14 = vpop.eup %2060 }
 0x35f   : > { %v536_v15 = vmul.f32 %v2061_v14, %v2057_v61 }
 0x361   : > { %v538_v18 = vpack.c.bf16 %v536_v15, %v536_v15 }
 0x363   : > { %1882 = vmatmul.mubr.msk.bf16.vlgmr.msra.gmra.mxu0 %vm406_vm3, %v538_v18  ;;  %1888 = vmatmul.mubr.msk.bf16.vlgmr.msra.gmra.mxu1 %vm406_vm3, %v637_v19 }
 0x364   : > { %1892 = vmatpush3.bf16.xpose.msra.mxu0 %v694_v21  ;;  %1893 = vmatprep.mubr.msk.bf16.mxu0 %vm2136_vm1, %v2135_v3 }
 0x365   : > { %1903 = vmatprep.subr.bf16.mxu0 %v2135_v3  ;;  %1899 = vmatprep.mubr.msk.bf16.mxu1 %vm2136_vm1, %v2135_v3 }
 0x36b   : > { %1894 = vmatmul.mubr.msk.bf16.vlgmr.msra.gmra.mxu0 %vm406_vm3, %v687_v22 }
 0x36c   : > { %1905 = vmatprep.mubr.msk.bf16.mxu0 %vm2136_vm1, %v2135_v3 }
 0x41b   : > { %v2319_v23 = vpop.f32.mrf.mxu1 }
 0x41d   : > { %v1877_v24 = vpop.f32.mrf.mxu1 }
 0x41f   : > { %v585_v25 = vpop.f32.mrf.mxu1 }
 0x421   : > { %v1878_v26 = vpop.f32.mrf.mxu1 }
 0x423   : > { %v2321_v27 = vpop.f32.mrf.mxu0  ;;  %v680_v28 = vpop.f32.mrf.mxu1 }
 0x424   : > { %v736_v29 = vmul.f32 0.35355338, %v680_v28 }
 0x425   : > { %v1883_v30 = vpop.f32.mrf.mxu0  ;;  %v1889_v31 = vpop.f32.mrf.mxu1 }
 0x426   : > { %v738_v33 = vadd.f32 %v736_v29, %v2283_v32 }
 0x427   : > { %v633_v34 = vpop.f32.mrf.mxu0  ;;  %v683_v35 = vpop.f32.mrf.mxu1 }
 0x428   : > { %v740_v36 = vsel %vm406_vm3, %v738_v33, -inf }
 0x429   : > { %741 = vmax.xlane.f32.xlu1 %v740_v36  ;;  %v1884_v37 = vpop.f32.mrf.mxu0  ;;  %v1890_v38 = vpop.f32.mrf.mxu1 }
 0x42b   : > { %v730_v39 = vpop.f32.mrf.mxu0 }
 0x42c   : > { %v737_v40 = vmul.f32 0.35355338, %v730_v39 }
 0x42d   : > { %v1895_v42 = vpop.f32.mrf.mxu0 }
 0x42e   : > { %v739_v43 = vadd.f32 %v737_v40, %v2287_v41 }
 0x42f   : > { %v733_v44 = vpop.f32.mrf.mxu0 }
 0x430   : > { %v743_v45 = vsel %vm406_vm3, %v739_v43, -inf }
 0x431   : > { %744 = vmax.xlane.f32.xlu0 %v743_v45  ;;  %v1896_v46 = vpop.f32.mrf.mxu0 }
 0x43a   : > { %764 = vrot.lane.b32.xlu1 %v2260_v16, %s2142_s27 }
 0x43e   : > { %862 = vrot.lane.b32.xlu1 %v2260_v16, %s2143_s28 }
 0x447   : > { %812 = vrot.lane.b32.xlu0 %v2264_v20, %s2142_s27 }
 0x44b   : > { %860 = vrot.lane.b32.xlu0 %v2260_v16, %s2144_s29 }
 0x4b2   : > { %v742_v47 = vpop.xlane.xlu1 %741 }
 0x4b3   : > { %v746_v48 = vsub.f32 %v738_v33, %v742_v47 }
 0x4b5   : > { %v748_v49 = vmul.f32 1.442695, %v746_v48 }
 0x4b6   : > { %v765_v50 = vpop.permute.xlu1 %764 }
 0x4b7   : > { %2062 = vpow2.f32 %v748_v49  ;;  %v770_v51 = vsel %vm544_vm4, %v765_v50, 0 }
 0x4b8   : > { %1898 = vmatpush3.bf16.msra.mxu1 %v770_v51 }
 0x4b9   : > { %1909 = vmatprep.subr.bf16.mxu1 %v2135_v3 }
 0x4ba   : > { %v745_v52 = vpop.xlane.xlu0 %744  ;;  %v863_v61 = vpop.permute.xlu1 %862 }
 0x4bb   : > { %v747_v53 = vsub.f32 %v739_v43, %v745_v52  ;;  %v868_v8 = vsel %vm406_vm3, %v863_v61, 0 }
 0x4bd   : > { %v750_v54 = vmul.f32 1.442695, %v747_v53 }
 0x4be   : > { %v813_v55 = vpop.permute.xlu0 %812 }
 0x4bf   : > { %2064 = vpow2.f32 %v750_v54  ;;  %v818_v56 = vsel %vm544_vm4, %v813_v55, 0 }
 0x4c0   : > { %1904 = vmatpush3.bf16.msra.mxu0 %v818_v56 }
 0x4c1   : > { %1915 = vmatprep.subr.bf16.mxu0 %v2135_v3 }
 0x4c2   : > { %v861_v17 = vpop.permute.xlu0 %860 }
 0x4c4   : > { %v2063_v57 = vpop.eup %2062 }
 0x4c5   : > { %v752_v58 = vsel %vm406_vm3, %v2063_v57, 0.0 }
 0x4c6   : > { %753 = vadd.xlane.f32.xlu1 %v752_v58 }
 0x4cc   : > { %v2065_v59 = vpop.eup %2064 }
 0x4cd   : > { %v755_v60 = vsel %vm406_vm3, %v2065_v59, 0.0 }
 0x4ce   : > { %756 = vadd.xlane.f32.xlu1 %v755_v60 }
 0x4df   : > { %912 = vrot.lane.b32.xlu1 %v2264_v20, %s2143_s28 }
 0x4e3   : > { %910 = vrot.lane.b32.xlu1 %v2264_v20, %s2144_s29 }
 0x54f   : > { %v754_v62 = vpop.xlane.xlu1 %753 }
 0x550   : > { %2066 = vrcp.f32 %v754_v62 }
 0x557   : > { %v757_v63 = vpop.xlane.xlu1 %756 }
 0x558   : > { %2068 = vrcp.f32 %v757_v63 }
 0x55b   : > { %v913_v14 = vpop.permute.xlu1 %912 }
 0x55c   : > { %v918_v18 = vsel %vm406_vm3, %v913_v14, 0 }
 0x55d   : > { %v2067_v0 = vpop.eup %2066 }
 0x55e   : > { %v760_v1 = vmul.f32 %v2067_v0, %v2063_v57 }
 0x55f   : > { %v911_v19 = vpop.permute.xlu1 %910 }
 0x560   : > { %v762_v7 = vpack.c.bf16 %v760_v1, %v760_v1 }
 0x562   : > { %1900 = vmatmul.mubr.msk.bf16.vlgmr.msra.gmra.mxu1 %vm406_vm3, %v762_v7 }
 0x563   : > { %1910 = vmatpush3.bf16.xpose.msra.mxu1 %v868_v8  ;;  %1911 = vmatprep.mubr.msk.bf16.mxu1 %vm2136_vm1, %v2135_v3 }
 0x564   : > { %1921 = vmatprep.subr.bf16.mxu1 %v2135_v3 }
 0x565   : > { %v2069_v10 = vpop.eup %2068 }
 0x566   : > { %v761_v13 = vmul.f32 %v2069_v10, %v2065_v59 }
 0x568   : > { %v763_v15 = vpack.c.bf16 %v761_v13, %v761_v13 }
 0x56a   : > { %1906 = vmatmul.mubr.msk.bf16.vlgmr.msra.gmra.mxu0 %vm406_vm3, %v763_v15  ;;  %1912 = vmatmul.mubr.msk.bf16.vlgmr.msra.gmra.mxu1 %vm406_vm3, %v861_v17 }
 0x56b   : > { %1916 = vmatpush3.bf16.xpose.msra.mxu0 %v918_v18  ;;  %1917 = vmatprep.mubr.msk.bf16.mxu0 %vm2136_vm1, %v2135_v3 }
 0x56c   : > { %1927 = vmatprep.subr.bf16.mxu0 %v2135_v3  ;;  %1923 = vmatprep.mubr.msk.bf16.mxu1 %vm2136_vm1, %v2135_v3 }
 0x572   : > { %1918 = vmatmul.mubr.msk.bf16.vlgmr.msra.gmra.mxu0 %vm406_vm3, %v911_v19 }
 0x573   : > { %1929 = vmatprep.mubr.msk.bf16.mxu0 %vm2136_vm1, %v2135_v3 }
 0x622   : > { %v2355_v21 = vpop.f32.mrf.mxu1 }
 0x624   : > { %v1901_v22 = vpop.f32.mrf.mxu1 }
 0x626   : > { %v809_v24 = vpop.f32.mrf.mxu1 }
 0x628   : > { %v1902_v25 = vpop.f32.mrf.mxu1 }
 0x62a   : > { %v2357_v26 = vpop.f32.mrf.mxu0  ;;  %v904_v28 = vpop.f32.mrf.mxu1 }
 0x62b   : > { %v2027_v29 = vpack.i.bf16 %v2357_v26, %v2355_v21  ;;  %v960_v30 = vmul.f32 0.35355338, %v904_v28 }
 0x62c   : > { %v1907_v31 = vpop.f32.mrf.mxu0  ;;  %v1913_v33 = vpop.f32.mrf.mxu1 }
 0x62d   : > { %v962_v34 = vadd.f32 %v960_v30, %v2283_v32 }
 0x62e   : > { %v857_v35 = vpop.f32.mrf.mxu0  ;;  %v907_v36 = vpop.f32.mrf.mxu1 }
 0x62f   : > { %v964_v37 = vsel %vm406_vm3, %v962_v34, -inf }
 0x630   : > { %965 = vmax.xlane.f32.xlu0 %v964_v37  ;;  %v1908_v38 = vpop.f32.mrf.mxu0  ;;  %v1914_v39 = vpop.f32.mrf.mxu1 }
 0x632   : > { %v954_v40 = vpop.f32.mrf.mxu0 }
 0x633   : > { %v961_v42 = vmul.f32 0.35355338, %v954_v40 }
 0x634   : > { %v1919_v43 = vpop.f32.mrf.mxu0 }
 0x635   : > { %v963_v44 = vadd.f32 %v961_v42, %v2287_v41 }
 0x636   : > { %v957_v45 = vpop.f32.mrf.mxu0 }
 0x637   : > { %v967_v46 = vsel %vm406_vm3, %v963_v44, -inf }
 0x638   : > { %968 = vmax.xlane.f32.xlu1 %v967_v46  ;;  %v1920_v47 = vpop.f32.mrf.mxu0 }
 0x649   : > { %988 = vrot.lane.b32.xlu1 %v2260_v16, %s2145_s30 }
 0x64d   : > { %1086 = vrot.lane.b32.xlu1 %v2260_v16, %s2146_s8 }
 0x651   : > { %1136 = vrot.lane.b32.xlu1 %v2264_v20, %s2146_s8 }
 0x655   : > { %1134 = vrot.lane.b32.xlu1 %v2264_v20, %s2147_s9 }
 0x6b9   : > { %v966_v48 = vpop.xlane.xlu0 %965 }
 0x6ba   : > { %v970_v49 = vsub.f32 %v962_v34, %v966_v48 }
 0x6bc   : > { %v972_v50 = vmul.f32 1.442695, %v970_v49 }
 0x6be   : > { %2070 = vpow2.f32 %v972_v50 }
 0x6c1   : > { %v969_v51 = vpop.xlane.xlu1 %968 }
 0x6c2   : > { %v971_v52 = vsub.f32 %v963_v44, %v969_v51 }
 0x6c4   : > { %v974_v53 = vmul.f32 1.442695, %v971_v52 }
 0x6c5   : > { %v989_v54 = vpop.permute.xlu1 %988 }
 0x6c6   : > { %2072 = vpow2.f32 %v974_v53  ;;  %v994_v55 = vsel %vm544_vm4, %v989_v54, 0 }
 0x6c7   : > { %1922 = vmatpush3.bf16.msra.mxu1 %v994_v55 }
 0x6c8   : > { %1933 = vmatprep.subr.bf16.mxu1 %v2135_v3 }
 0x6c9   : > { %v1087_v7 = vpop.permute.xlu1 %1086 }
 0x6ca   : > { %v1092_v10 = vsel %vm406_vm3, %v1087_v7, 0 }
 0x6cb   : > { %v2071_v56 = vpop.eup %2070 }
 0x6cc   : > { %v976_v57 = vsel %vm406_vm3, %v2071_v56, 0.0 }
 0x6cd   : > { %977 = vadd.xlane.f32.xlu0 %v976_v57  ;;  %v1137_v15 = vpop.permute.xlu1 %1136 }
 0x6ce   : > { %v1142_v19 = vsel %vm406_vm3, %v1137_v15, 0 }
 0x6d1   : > { %v1135_v22 = vpop.permute.xlu1 %1134 }
 0x6d3   : > { %v2073_v58 = vpop.eup %2072 }
 0x6d4   : > { %v979_v59 = vsel %vm406_vm3, %v2073_v58, 0.0 }
 0x6d5   : > { %980 = vadd.xlane.f32.xlu0 %v979_v59 }
 0x6eb   : > { %1036 = vrot.lane.b32.xlu0 %v2264_v20, %s2145_s30 }
 0x6ef   : > { %1084 = vrot.lane.b32.xlu0 %v2260_v16, %s2147_s9 }
 0x756   : > { %v978_v60 = vpop.xlane.xlu0 %977 }
 0x757   : > { %2074 = vrcp.f32 %v978_v60 }
 0x75e   : > { %v981_v61 = vpop.xlane.xlu0 %980 }
 0x75f   : > { %2076 = vrcp.f32 %v981_v61 }
 0x762   : > { %v1037_v62 = vpop.permute.xlu0 %1036 }
 0x763   : > { %v1042_v63 = vsel %vm544_vm4, %v1037_v62, 0 }
 0x764   : > { %v2075_v0 = vpop.eup %2074  ;;  %1928 = vmatpush3.bf16.msra.mxu0 %v1042_v63 }
 0x765   : > { %v984_v1 = vmul.f32 %v2075_v0, %v2071_v56  ;;  %1939 = vmatprep.subr.bf16.mxu0 %v2135_v3 }
 0x766   : > { %v1085_v18 = vpop.permute.xlu0 %1084 }
 0x767   : > { %v986_v8 = vpack.c.bf16 %v984_v1, %v984_v1 }
 0x769   : > { %1924 = vmatmul.mubr.msk.bf16.vlgmr.msra.gmra.mxu1 %vm406_vm3, %v986_v8 }
 0x76a   : > { %1934 = vmatpush3.bf16.xpose.msra.mxu1 %v1092_v10  ;;  %1935 = vmatprep.mubr.msk.bf16.mxu1 %vm2136_vm1, %v2135_v3 }
 0x76b   : > { %1945 = vmatprep.subr.bf16.mxu1 %v2135_v3 }
 0x76c   : > { %v2077_v13 = vpop.eup %2076 }
 0x76d   : > { %v985_v14 = vmul.f32 %v2077_v13, %v2073_v58 }
 0x76f   : > { %v987_v17 = vpack.c.bf16 %v985_v14, %v985_v14 }
 0x771   : > { %1930 = vmatmul.mubr.msk.bf16.vlgmr.msra.gmra.mxu0 %vm406_vm3, %v987_v17  ;;  %1936 = vmatmul.mubr.msk.bf16.vlgmr.msra.gmra.mxu1 %vm406_vm3, %v1085_v18 }
 0x772   : > { %1940 = vmatpush3.bf16.xpose.msra.mxu0 %v1142_v19  ;;  %1941 = vmatprep.mubr.msk.bf16.mxu0 %vm2136_vm1, %v2135_v3 }
 0x773   : > { %1951 = vmatprep.subr.bf16.mxu0 %v2135_v3  ;;  %1947 = vmatprep.mubr.msk.bf16.mxu1 %vm2136_vm1, %v2135_v3 }
 0x779   : > { %1942 = vmatmul.mubr.msk.bf16.vlgmr.msra.gmra.mxu0 %vm406_vm3, %v1135_v22 }
 0x77a   : > { %1953 = vmatprep.mubr.msk.bf16.mxu0 %vm2136_vm1, %v2135_v3 }
 0x829   : > { %v1030_v24 = vpop.f32.mrf.mxu1 }
 0x82b   : > { %v1925_v25 = vpop.f32.mrf.mxu1 }
 0x82d   : > { %v1033_v28 = vpop.f32.mrf.mxu1 }
 0x82f   : > { %v1926_v30 = vpop.f32.mrf.mxu1 }
 0x831   : > { %v1078_v31 = vpop.f32.mrf.mxu0  ;;  %v1128_v33 = vpop.f32.mrf.mxu1 }
 0x832   : > { %v2032_v34 = vpack.i.bf16 %v1078_v31, %v1030_v24  ;;  %v1184_v35 = vmul.f32 0.35355338, %v1128_v33 }
 0x833   : > { %v1931_v36 = vpop.f32.mrf.mxu0  ;;  %v1937_v37 = vpop.f32.mrf.mxu1 }
 0x834   : > { %v1186_v38 = vadd.f32 %v1184_v35, %v2283_v32 }
 0x835   : > { %v1081_v39 = vpop.f32.mrf.mxu0  ;;  %v1131_v40 = vpop.f32.mrf.mxu1 }
 0x836   : > { %v1188_v42 = vsel %vm406_vm3, %v1186_v38, -inf }
 0x837   : > { %1189 = vmax.xlane.f32.xlu0 %v1188_v42  ;;  %v1932_v43 = vpop.f32.mrf.mxu0  ;;  %v1938_v44 = vpop.f32.mrf.mxu1 }
 0x839   : > { %v1178_v45 = vpop.f32.mrf.mxu0 }
 0x83a   : > { %v1185_v46 = vmul.f32 0.35355338, %v1178_v45 }
 0x83b   : > { %v1943_v47 = vpop.f32.mrf.mxu0 }
 0x83c   : > { %v1187_v48 = vadd.f32 %v1185_v46, %v2287_v41 }
 0x83d   : > { %v1181_v49 = vpop.f32.mrf.mxu0 }
 0x83e   : > { %v1191_v50 = vsel %vm406_vm3, %v1187_v48, -inf }
 0x83f   : > { %1192 = vmax.xlane.f32.xlu1 %v1191_v50  ;;  %v1944_v51 = vpop.f32.mrf.mxu0 }
 0x850   : > { %1212 = vrot.lane.b32.xlu1 %v2260_v16, %s2148_s11 }
 0x854   : > { %1343 = vrot.lane.b32.xlu1 %v2227_v2, %s2149_s12 }
 0x858   : > { %2028 = vrot.lane.b32.xlu1 %v2027_v29, %s2150_s13 }
 0x8c0   : > { %v1190_v32 = vpop.xlane.xlu0 %1189 }
 0x8c1   : > { %v1194_v41 = vsub.f32 %v1186_v38, %v1190_v32 }
 0x8c3   : > { %v1196_v52 = vmul.f32 1.442695, %v1194_v41 }
 0x8c5   : > { %2078 = vpow2.f32 %v1196_v52 }
 0x8c8   : > { %v1193_v53 = vpop.xlane.xlu1 %1192 }
 0x8c9   : > { %v1195_v54 = vsub.f32 %v1187_v48, %v1193_v53 }
 0x8cb   : > { %v1198_v55 = vmul.f32 1.442695, %v1195_v54 }
 0x8cc   : > { %v1213_v56 = vpop.permute.xlu1 %1212 }
 0x8cd   : > { %2080 = vpow2.f32 %v1198_v55  ;;  %v1218_v16 = vsel %vm544_vm4, %v1213_v56, 0 }
 0x8ce   : > { %1946 = vmatpush3.bf16.msra.mxu1 %v1218_v16 }
 0x8cf   : > { %1957 = vmatprep.subr.bf16.mxu1 %v2135_v3 }
 0x8d0   : > { %v1344_v0 = vpop.permute.xlu1 %1343 }
 0x8d2   : > { %v2079_v2 = vpop.eup %2078 }
 0x8d3   : > { %v1200_v57 = vsel %vm406_vm3, %v2079_v2, 0.0 }
 0x8d4   : > { %1201 = vadd.xlane.f32.xlu0 %v1200_v57  ;;  %v2029_v25 = vpop.permute.xlu1 %2028 }
 0x8d5   : > { %v2031_v28 = vunpack.i.h.bf16 %v2029_v25  ;;  %v2030_v30 = vunpack.i.l.bf16 %v2029_v25  ;;  %v2050_v25 = vld [vmem:[%s2213_s10 + $0x18] sm:$0xff]  }
 0x8d7   : > { %v1333_v35 = vsel %vm406_vm3, %v2321_v27, %v2031_v28  ;;  %v1332_v36 = vsel %vm406_vm3, %v2319_v23, %v2030_v30  ;;  %v2051_v28 = vld [vmem:[%s2213_s10 + $0x10] sm:$0xff]   ;;  %v2052_v30 = vld [vmem:[%s2213_s10 + $0x8] sm:$0xff]  }
 0x8da   : > { %v2081_v21 = vpop.eup %2080 }
 0x8db   : > { %v1203_v26 = vsel %vm406_vm3, %v2081_v21, 0.0 }
 0x8dc   : > { %1204 = vadd.xlane.f32.xlu0 %v1203_v26  ;;  %v2046_v26 = vld [vmem:[%s2213_s10 + $0x38] sm:$0xff]  }
 0x8f2   : > { %1260 = vrot.lane.b32.xlu0 %v2264_v20, %s2148_s11 }
 0x8f6   : > { %2033 = vrot.lane.b32.xlu0 %v2032_v34, %s2151_s15 }
 0x8fa   : > { %1341 = vrot.lane.b32.xlu0 %v2232_v4, %s2149_s12 }
 0x95d   : > { %v1202_v29 = vpop.xlane.xlu0 %1201 }
 0x95e   : > { %2082 = vrcp.f32 %v1202_v29 }
 0x965   : > { %v1205_v58 = vpop.xlane.xlu0 %1204 }
 0x966   : > { %2084 = vrcp.f32 %v1205_v58 }
 0x969   : > { %v1261_v59 = vpop.permute.xlu0 %1260 }
 0x96a   : > { %v1266_v60 = vsel %vm544_vm4, %v1261_v59, 0 }
 0x96b   : > { %v2083_v61 = vpop.eup %2082  ;;  %1952 = vmatpush3.bf16.msra.mxu0 %v1266_v60 }
 0x96c   : > { %v1208_v62 = vmul.f32 %v2083_v61, %v2079_v2  ;;  %1965 = vmatprep.subr.bf16.mxu0 %v2135_v3 }
 0x96d   : > { %v2034_v7 = vpop.permute.xlu0 %2033 }
 0x96e   : > { %v1210_v63 = vpack.c.bf16 %v1208_v62, %v1208_v62  ;;  %v2036_v31 = vunpack.i.h.bf16 %v2034_v7  ;;  %v2035_v33 = vunpack.i.l.bf16 %v2034_v7 }
 0x970   : > { %1948 = vmatmul.mubr.msk.bf16.vlgmr.msra.gmra.mxu1 %vm406_vm3, %v1210_v63  ;;  %v1335_v39 = vsel %vm1334_vm5, %v1332_v36, %v2035_v33  ;;  %v1336_v40 = vsel %vm1334_vm5, %v1333_v35, %v2036_v31  ;;  %v1426_v63 = vsub.s32 1, %v2250_v9  ;;  %v2053_v31 = vld [vmem:[%s2213_s10] sm:$0xff]   ;;  %v1443_v33 = vsub.s32 3, %v2250_v9 }
 0x971   : > { %1958 = vmatpush3.bf16.msra.mxu1 %v1344_v0  ;;  %1961 = vmatprep.mubr.msk.bf16.mxu1 %vm2136_vm1, %v2135_v3  ;;  %v1342_v10 = vpop.permute.xlu0 %1341 }
 0x972   : > { %1959 = vmatprep.subr.bf16.mxu1 %v2135_v3 }
 0x973   : > { %v2085_v4 = vpop.eup %2084 }
 0x974   : > { %v1209_v20 = vmul.f32 %v2085_v4, %v2081_v21  ;;  %v2045_v21 = vld [vmem:[%s2208_s7] sm:$0xff]  }
 0x975   : > { %1960 = vmatpush3.bf16.msra.mxu1 %v1342_v10 }
 0x976   : > { %v1211_v1 = vpack.c.bf16 %v1209_v20, %v1209_v20  ;;  %1973 = vmatprep.subr.bf16.mxu1 %v2135_v3  ;;  %v1427_v20 = vrot.slane %v2254_v11, %v1426_v63 }
 0x978   : > { %1954 = vmatmul.mubr.msk.bf16.vlgmr.msra.gmra.mxu0 %vm406_vm3, %v1211_v1  ;;  %v1432_v1 = vsub.s32 2, %v2250_v9 }
 0x979   : > { %1969 = vmatprep.mubr.msk.bf16.mxu0 %vm2136_vm1, %v2135_v3 }
 0xa30   : > { %v1254_v8 = vpop.f32.mrf.mxu1 }
 0xa32   : > { %v1949_v13 = vpop.f32.mrf.mxu1 }
 0xa33   : > { %v1433_v13 = vrot.slane %v2254_v11, %v1432_v1  ;;  %v1652_v1 = vsub.s32 5, %v2250_v9 }
 0xa34   : > { %v1257_v14 = vpop.f32.mrf.mxu1 }
 0xa36   : > { %v1950_v15 = vpop.f32.mrf.mxu1 }
 0xa38   : > { %v1302_v17 = vpop.f32.mrf.mxu0 }
 0xa39   : > { %v2037_v18 = vpack.i.bf16 %v1302_v17, %v1254_v8 }
 0xa3a   : > { %v1955_v19 = vpop.f32.mrf.mxu0 }
 0xa3b   : > { %2038 = vrot.lane.b32.xlu1 %v2037_v18, %s2152_s16  ;;  %v2047_v19 = vld [vmem:[%s2213_s10 + $0x30] sm:$0xff]  }
 0xa3c   : > { %v1305_v22 = vpop.f32.mrf.mxu0 }
 0xa3d   : > { %v2048_v22 = vld [vmem:[%s2213_s10 + $0x28] sm:$0xff]  }
 0xa3e   : > { %v1956_v24 = vpop.f32.mrf.mxu0 }
 0xa3f   : > { %1348 = vrot.lane.b32.xlu1 %v2257_v12, %s2149_s12  ;;  %v2049_v24 = vld [vmem:[%s2213_s10 + $0x20] sm:$0xff]  }
 0xaad   : > { %v2039_v34 = vpop.permute.xlu1 %2038 }
 0xaae   : > { %v2041_v37 = vunpack.i.h.bf16 %v2039_v34  ;;  %v2040_v38 = vunpack.i.l.bf16 %v2039_v34  ;;  %v1444_v34 = vrot.slane %v2254_v11, %v1443_v33 }
 0xab0   : > { %v1339_v42 = vsel %vm1337_vm6, %v1336_v40, %v2041_v37  ;;  %v1338_v12 = vsel %vm1337_vm6, %v1335_v39, %v2040_v38 }
 0xab1   : > { %v1340_v43 = vpack.c.bf16 %v1339_v42, %v1338_v12  ;;  %v1349_v44 = vpop.permute.xlu1 %1348 }
 0xab3   : > { %1962 = vmatmul.mubr.msk.bf16.vlgmr.msra.gmra.mxu1 %vm353_vm2, %v1340_v43 }
 0xab4   : > { %1989 = vmatprep.mubr.msk.bf16.mxu1 %vm2136_vm1, %v2135_v3  ;;  %1974 = vmatpush3.bf16.msra.mxu1 %v2046_v26 }
 0xab5   : > { %1975 = vmatprep.subr.bf16.mxu1 %v2135_v3 }
 0xab8   : > { %1976 = vmatpush3.bf16.msra.mxu1 %v2047_v19 }
 0xab9   : > { %1977 = vmatprep.subr.bf16.mxu1 %v2135_v3 }
 0xabc   : > { %1978 = vmatpush3.bf16.msra.mxu1 %v2048_v22 }
 0xabd   : > { %1979 = vmatprep.subr.bf16.mxu1 %v2135_v3 }
 0xac0   : > { %1980 = vmatpush3.bf16.msra.mxu1 %v2049_v24 }
 0xac1   : > { %1981 = vmatprep.subr.bf16.mxu1 %v2135_v3 }
 0xac4   : > { %1982 = vmatpush3.bf16.msra.mxu1 %v2050_v25 }
 0xac5   : > { %1983 = vmatprep.subr.bf16.mxu1 %v2135_v3 }
 0xac8   : > { %1984 = vmatpush3.bf16.msra.mxu1 %v2051_v28 }
 0xac9   : > { %1985 = vmatprep.subr.bf16.mxu1 %v2135_v3 }
 0xacc   : > { %1986 = vmatpush3.bf16.msra.mxu1 %v2052_v30 }
 0xacd   : > { %1987 = vmatprep.subr.bf16.mxu1 %v2135_v3 }
 0xad0   : > { %1988 = vmatpush3.bf16.msra.mxu1 %v2053_v31 }
 0xb73   : > { %v1388_v45 = vpop.f32.mrf.mxu1 }
 0xb74   : > { %v1389_v46 = vadd.f32 %v1388_v45, %v1349_v44 }
 0xb75   : > { %v1963_v47 = vpop.f32.mrf.mxu1 }
 0xb76   : > { %v1395_v27 = vadd.f32 %v1389_v46, %v2236_v5 }
 0xb77   : > { %v1391_v48 = vpop.f32.mrf.mxu1 }
 0xb78   : > { %v1392_v23 = vadd.f32 %v1391_v48, %v1349_v44  ;;  %v1397_v49 = vsel %vm353_vm2, %v1395_v27, 0.0 }
 0xb79   : > { %1398 = vadd.xlane.f32.xlu0 %v1397_v49  ;;  %v1964_v50 = vpop.f32.mrf.mxu1  ;;  %v1531_v49 = vsub.s32 4, %v2250_v9 }
 0xb7a   : > { %v1396_v51 = vadd.f32 %v1392_v23, %v2238_v6  ;;  %v2044_v6 = vld [vmem:[%s2208_s7 + $0x8] sm:$0xff]   ;;  %s2153_s7 = smov [#allocation2]  }
 0xb7b   : > { %1966 = vmatpush3.bf16.msra.mxu0 %v2044_v6  ;;  %v1532_v50 = vrot.slane %v2254_v11, %v1531_v49  ;;  %s1670_s10 = sshll.u32 %s2153_s7, 4  ;;  %s1671_s10 = int_to_ptr.vmem [resolvable:$true] %s1670_s10 }
 0xb7c   : > { %v1400_v32 = vsel %vm353_vm2, %v1396_v51, 0.0  ;;  %1967 = vmatprep.subr.bf16.mxu0 %v2135_v3  ;;  %p2106_p9 = scmp.lt.s32.totalorder %s1671_s10, %s1671_s10 }
 0xb7d   : > { %1401 = vadd.xlane.f32.xlu1 %v1400_v32 }
 0xb7f   : > { %1968 = vmatpush3.bf16.msra.mxu0 %v2045_v21 }
 0xc02   : > { %v1399_v41 = vpop.xlane.xlu0 %1398 }
 0xc03   : > { %v1404_v52 = vmul.f32 0.03125, %v1399_v41 }
 0xc05   : > { %v1406_v53 = vsub.f32 %v1395_v27, %v1404_v52 }
 0xc06   : > { %v1402_v54 = vpop.xlane.xlu1 %1401 }
 0xc07   : > { %v1405_v55 = vmul.f32 0.03125, %v1402_v54  ;;  %v1408_v5 = vmul.f32 %v1406_v53, %v1406_v53 }
 0xc09   : > { %v1407_v56 = vsub.f32 %v1396_v51, %v1405_v55  ;;  %v1410_v16 = vsel %vm353_vm2, %v1408_v5, 0.0 }
 0xc0a   : > { %1411 = vadd.xlane.f32.xlu0 %v1410_v16 }
 0xc0b   : > { %v1409_v2 = vmul.f32 %v1407_v56, %v1407_v56 }
 0xc0d   : > { %v1413_v57 = vsel %vm353_vm2, %v1409_v2, 0.0 }
 0xc0e   : > { %1414 = vadd.xlane.f32.xlu0 %v1413_v57 }
 0xc93   : > { %v1412_v29 = vpop.xlane.xlu0 %1411 }
 0xc94   : > { %v1416_v58 = vmul.f32 0.03125, %v1412_v29 }
 0xc96   : > { %v1418_v59 = vadd.f32 1e-12, %v1416_v58 }
 0xc97   : > { %v1415_v60 = vpop.xlane.xlu0 %1414 }
 0xc98   : > { %2086 = vrsqrt.f32 %v1418_v59  ;;  %v1417_v61 = vmul.f32 0.03125, %v1415_v60 }
 0xc9a   : > { %v1419_v62 = vadd.f32 1e-12, %v1417_v61 }
 0xc9c   : > { %2088 = vrsqrt.f32 %v1419_v62 }
 0xca5   : > { %v2087_v0 = vpop.eup %2086 }
 0xca6   : > { %v1422_v4 = vmul.f32 %v2087_v0, %v1406_v53 }
 0xca8   : > { %v1428_v10 = vmul.f32 %v1427_v20, %v1422_v4 }
 0xca9   : > { %v2089_v7 = vpop.eup %2088 }
 0xcaa   : > { %v1423_v8 = vmul.f32 %v2089_v7, %v1407_v56  ;;  %v1434_v15 = vadd.f32 %v1433_v13, %v1428_v10  ;;  %v1658_v7 = vsub.s32 6, %v2250_v9 }
 0xcac   : > { %v1429_v14 = vmul.f32 %v1427_v20, %v1423_v8  ;;  %v2098_v8 = vld [vmem:[%s2218_s14] sm:$0xff]  ;;  %s2099_s14 = scalar_lea.vmem %s1671_s10, 256 }
 0xcad   : > { %v1653_v10 = vrot.slane %v2098_v8, %v1652_v1  ;;  %p2100_p6 = scmp.ne.s32.totalorder %s1671_s10, %s2099_s14  ;;  %p2107_p10 = scmp.lt.s32.totalorder %s2099_s14, %s2099_s14 }
 0xcae   : > { %v1435_v17 = vadd.f32 %v1433_v13, %v1429_v14 }
 0xcaf   : > { %p2101_p7 = pnand %p2100_p6, %p1997_p5  ;;  %p2108_p11 = por %p2107_p10, %p2106_p9 }
 0xcb0   : > { %v1436_v18 = vpack.c.bf16 %v1435_v17, %v1434_v15 }
 0xcb1   : > { %p2102_p8 = pneg %p2101_p7 }
 0xcb2   : > { %1970 = vmatmul.mubr.msk.bf16.vlgmr.msra.gmra.mxu0 %vm353_vm2, %v1436_v18 }
 0xcb3   : > { %p2109_p12 = pnand %p2108_p11, %p2102_p8 }
 0xd72   : > { %v1494_v35 = vpop.f32.mrf.mxu0 }
 0xd73   : > { %v1495_v36 = vadd.f32 %v1494_v35, %v1444_v34 }
 0xd74   : > { %v1971_v37 = vpop.f32.mrf.mxu0 }
 0xd75   : > { %v1504_v38 = vmul.f32 0.70710677, %v1495_v36  ;;  %v1501_v3 = vmul.f32 0.5, %v1495_v36 }
 0xd76   : > { %v1497_v39 = vpop.f32.mrf.mxu0 }
 0xd77   : > { %2090 = verf.f32 %v1504_v38  ;;  %v1498_v40 = vadd.f32 %v1497_v39, %v1444_v34 }
 0xd78   : > { %v1972_v42 = vpop.f32.mrf.mxu0 }
 0xd79   : > { %v1505_v12 = vmul.f32 0.70710677, %v1498_v40  ;;  %v1502_v46 = vmul.f32 0.5, %v1498_v40 }
 0xd7b   : > { %2092 = verf.f32 %v1505_v12 }
 0xd84   : > { %v2091_v43 = vpop.eup %2090 }
 0xd85   : > { %v1508_v44 = vadd.f32 1.0, %v2091_v43 }
 0xd87   : > { %v1510_v27 = vmul.f32 %v1508_v44, %v1501_v3 }
 0xd88   : > { %v2093_v45 = vpop.eup %2092 }
 0xd89   : > { %v1509_v47 = vadd.f32 1.0, %v2093_v45 }
 0xd8b   : > { %v1511_v48 = vmul.f32 %v1509_v47, %v1502_v46 }
 0xd8d   : > { %v1512_v23 = vpack.c.bf16 %v1511_v48, %v1510_v27 }
 0xd8f   : > { %1990 = vmatmul.mubr.bf16.vlgmr.msra.gmra.mxu1 %v1512_v23 }
 0xe4f   : > { %v1615_v51 = vpop.f32.mrf.mxu1 }
 0xe50   : > { %v1616_v32 = vadd.f32 %v1615_v51, %v1532_v50 }
 0xe51   : > { %v1991_v41 = vpop.f32.mrf.mxu1 }
 0xe52   : > { %v1622_v52 = vadd.f32 %v1616_v32, %v1434_v15  ;;  %v1659_v15 = vrot.slane %v2098_v8, %v1658_v7 }
 0xe53   : > { %v1618_v53 = vpop.f32.mrf.mxu1 }
 0xe54   : > { %v1619_v54 = vadd.f32 %v1618_v53, %v1532_v50  ;;  %v1624_v55 = vsel %vm353_vm2, %v1622_v52, 0.0 }
 0xe55   : > { %1625 = vadd.xlane.f32.xlu1 %v1624_v55  ;;  %v1992_v5 = vpop.f32.mrf.mxu1 }
 0xe56   : > { %v1623_v56 = vadd.f32 %v1619_v54, %v1435_v17 }
 0xe58   : > { %v1627_v16 = vsel %vm353_vm2, %v1623_v56, 0.0 }
 0xe59   : > { %1628 = vadd.xlane.f32.xlu0 %v1627_v16 }
 0xede   : > { %v1626_v2 = vpop.xlane.xlu1 %1625 }
 0xedf   : > { %v1630_v57 = vmul.f32 0.03125, %v1626_v2 }
 0xee1   : > { %v1632_v6 = vsub.f32 %v1622_v52, %v1630_v57 }
 0xee2   : > { %v1629_v21 = vpop.xlane.xlu0 %1628 }
 0xee3   : > { %v1631_v26 = vmul.f32 0.03125, %v1629_v21  ;;  %v1634_v11 = vmul.f32 %v1632_v6, %v1632_v6 }
 0xee5   : > { %v1633_v29 = vsub.f32 %v1623_v56, %v1631_v26  ;;  %v1636_v58 = vsel %vm353_vm2, %v1634_v11, 0.0 }
 0xee6   : > { %1637 = vadd.xlane.f32.xlu1 %v1636_v58 }
 0xee7   : > { %v1635_v59 = vmul.f32 %v1633_v29, %v1633_v29 }
 0xee9   : > { %v1639_v60 = vsel %vm353_vm2, %v1635_v59, 0.0 }
 0xeea   : > { %1640 = vadd.xlane.f32.xlu0 %v1639_v60 }
 0xf6f   : > { %v1638_v61 = vpop.xlane.xlu1 %1637 }
 0xf70   : > { %v1642_v62 = vmul.f32 0.03125, %v1638_v61 }
 0xf72   : > { %v1644_v63 = vadd.f32 1e-12, %v1642_v62 }
 0xf73   : > { %v1641_v0 = vpop.xlane.xlu0 %1640 }
 0xf74   : > { %2094 = vrsqrt.f32 %v1644_v63  ;;  %v1643_v4 = vmul.f32 0.03125, %v1641_v0 }
 0xf76   : > { %v1645_v20 = vadd.f32 1e-12, %v1643_v4 }
 0xf78   : > { %2096 = vrsqrt.f32 %v1645_v20 }
 0xf81   : > { %v2095_v13 = vpop.eup %2094 }
 0xf82   : > { %v1648_v14 = vmul.f32 %v2095_v13, %v1632_v6 }
 0xf84   : > { %v1654_v17 = vmul.f32 %v1653_v10, %v1648_v14 }
 0xf85   : > { %v2097_v18 = vpop.eup %2096 }
 0xf86   : > { %v1649_v19 = vmul.f32 %v2097_v18, %v1633_v29  ;;  %v1660_v22 = vadd.f32 %v1659_v15, %v1654_v17 }
 0xf88   : > { %v1655_v24 = vmul.f32 %v1653_v10, %v1649_v19  ;;  %1662 = vst.msk [vmem:[#allocation2] sm:$0xff] %vm353_vm2, %v1660_v22 }
 0xf8a   : > { %v1661_v25 = vadd.f32 %v1659_v15, %v1655_v24 }
 0xf8c   : > { %1663 = vst.msk [vmem:[#allocation2 + $0x8] sm:$0xff] %vm353_vm2, %v1661_v25 }
 0xf8d   : > { %2112 = shalt.err (!%p2109_p12)
}
 0xf8e   : > { %s2154_s17 = smov 128  }
 0xf8f   : > { %1994 = dma.vmem_to_hbm [thread:$0]  (%p1997_p5), %s1671_s10, 256, %s2494_s6, [#allocation3], %s2154_s17, %s2154_s17, %s2150_s13  }
 0xf90   : > { %2128 = dma.done.wait (%p1997_p5), [#allocation3], 256  }
 0xf91   : > { %2130 = vsyncadd (%p1997_p5), [#allocation3], 4294967040 }
 0xf92 PF: > { %s17_s21 = sadd.s32 1, %s2133_s21  }
 0xf93   : > { %p14_p13 = scmp.ge.s32.totalorder %s17_s21, 4  }
 0xf95   :  { %16 = sbr.rel (!%p14_p13) target bundleno = 1 (0x1), region = 84 }
 0xf9a   :  { %1686 = vsyncpa [#allocation3], 1 }
 0xf9b   :  { %1688 = vsyncpa [#allocation3 + $0x1], 1 }

</bundles_post_ra>
